<compile_context>
chip_gen: v6e
topology: v6e:2x2x1
jax: 0.10.0
libtpu: 0.0.40
codegen_flags: <defaults>
</compile_context>

<pallas_src>
import functools

import jax
import jax.numpy as jnp
from jax.experimental import pallas as pl
from jax.experimental.pallas import tpu as pltpu


# ----------------------------------------------------------------------------
# Small helpers
# ----------------------------------------------------------------------------
def _round_up(n, m):
    return ((n + m - 1) // m) * m


def _pad2(a, rows, cols):
    a = jnp.asarray(a, jnp.float32)
    return jnp.pad(a, ((0, rows - a.shape[0]), (0, cols - a.shape[1])))


def _vmem_capacity_bytes():
    """Generation-aware VMEM capacity (64 MiB v7x, 128 MiB v5e/v6e)."""
    try:
        return int(pltpu.get_tpu_info().vmem_capacity_bytes)
    except Exception:
        return 64 * 1024 * 1024  # conservative fallback (v7x per-TC VMEM)


def _block_spec(shape, index_map, buffers=None):
    """BlockSpec with optional pipelining depth (falls back if unsupported)."""
    if buffers is not None and hasattr(pl, "Buffered"):
        try:
            return pl.BlockSpec(shape, index_map,
                                pipeline_mode=pl.Buffered(buffers))
        except TypeError:
            pass
    return pl.BlockSpec(shape, index_map)


def _masked_log_softmax(out_f32, valid_cols):
    """log_softmax over the class axis, masking padded lanes to -inf."""
    col = jax.lax.broadcasted_iota(jnp.int32, out_f32.shape, 1)
    masked = jnp.where(col < valid_cols, out_f32, jnp.float32(-1e30))
    m = jnp.max(masked, axis=1, keepdims=True)
    z = masked - m
    lse = jnp.log(jnp.sum(jnp.exp(z), axis=1, keepdims=True))
    return z - lse


def _choose_tiles(N, vmem_cap):
    """Row tile tm, contraction tile tk, padded node count Np."""
    Np8 = _round_up(max(N, 8), 8)
    small_vmem = vmem_cap <= 72 * 1024 * 1024       # v7x-class (64 MiB/TC)
    tm = 256 if small_vmem else 512                  # row tile (sweepable)
    # Keep >= 2 row tiles when possible so both v7x TensorCores get work.
    while tm > 128 and _round_up(Np8, tm) // tm < 2:
        tm //= 2
    tk = min(512, _round_up(Np8, 128))               # contraction (Np) tile
    # tm / tk are powers of two >= 128, so max(tm, tk) is a common multiple.
    Np = _round_up(Np8, max(tm, tk))
    return tm, tk, Np


# ----------------------------------------------------------------------------
# Fused single-kernel path (L_hat resident in VMEM; L read from HBM once)
# ----------------------------------------------------------------------------
def _fused_kernel(l_ref, x_ref, w10_ref, w11_ref, b1_ref,
                  w20_ref, w21_ref, b2_ref, o_ref, *, num_class):
    L = l_ref[...]                                                     # (Np, Np) bf16
    x = x_ref[...]                                                     # (Np, Fp) bf16

    # ---- layer 1: relu(x @ W10 + (L @ x) @ W11 + b1) -------------------
    t1 = jnp.dot(L, x, preferred_element_type=jnp.float32)             # (Np, Fp) f32
    h = jnp.dot(x, w10_ref[...], preferred_element_type=jnp.float32)
    h = h + jnp.dot(t1.astype(jnp.bfloat16), w11_ref[...],
                    preferred_element_type=jnp.float32)
    h = jnp.maximum(h + b1_ref[...], 0.0).astype(jnp.bfloat16)         # (Np, Hp)
    # NOTE: padded node rows end up as relu(b1) (not 0).  This is harmless
    # because the padded COLUMNS of L are zero, so padded rows never
    # contaminate valid rows in the layer-2 L @ h term.
    # dropout(training=False) -> identity.

    # ---- layer 2: h @ W20 + (L @ h) @ W21 + b2, masked log_softmax ------
    t2 = jnp.dot(L, h, preferred_element_type=jnp.float32)             # (Np, Hp) f32
    out = jnp.dot(h, w20_ref[...], preferred_element_type=jnp.float32)
    out = out + jnp.dot(t2.astype(jnp.bfloat16), w21_ref[...],
                        preferred_element_type=jnp.float32)
    out = out + b2_ref[...]
    o_ref[...] = _masked_log_softmax(out, num_class).astype(o_ref.dtype)


def _fused_forward(arrays, meta, fused_bytes):
    (L_pad, x_pad, w10p, w11p, b1p, w20p, w21p, b2p) = arrays
    Np, Fp, Hp, Cp = meta["Np"], meta["Fp"], meta["Hp"], meta["Cp"]
    vmem_cap = meta["vmem_cap"]

    kernel = functools.partial(_fused_kernel, num_class=meta["C"])

    cost = pl.CostEstimate(
        flops=int(2 * Np * Np * (Fp + Hp)
                  + 2 * 2 * Np * (Fp * Hp + Hp * Cp)),
        transcendentals=int(Np * Cp),
        bytes_accessed=int(Np * Np * 2 + Np * Fp * 2 + Np * Cp * 4
                           + 2 * Fp * Hp * 2 + 2 * Hp * Cp * 2),
    )
    vmem_limit = int(min(vmem_cap * 3 // 4,
                         max(32 * 1024 * 1024, 2 * fused_bytes)))

    vmem = pl.BlockSpec(memory_space=pltpu.MemorySpace.VMEM)
    return pl.pallas_call(
        kernel,
        out_shape=jax.ShapeDtypeStruct((Np, Cp), jnp.float32),
        in_specs=[vmem] * 8,
        out_specs=pl.BlockSpec(memory_space=pltpu.MemorySpace.VMEM),
        compiler_params=pltpu.CompilerParams(vmem_limit_bytes=vmem_limit),
        cost_estimate=cost,
    )(L_pad, x_pad, w10p, w11p, b1p, w20p, w21p, b2p)


# ----------------------------------------------------------------------------
# Tiled path (row tiles x K-tiled contraction; for graphs too big for VMEM)
# ----------------------------------------------------------------------------
def _cheb_layer_kernel(l_ref, x_ref, w0_ref, w1_ref, b_ref, o_ref, acc_ref,
                       *, tm, tk, mode, valid_cols):
    """One ChebConv (K=2) layer, row tile i, contraction chunk k.

    l_ref : (tm, tk)   bf16  L_hat row/contraction tile
    x_ref : (Np, Fp)   bf16  full (padded) node features, VMEM-resident
    w0_ref: (Fp, W)    bf16  theta_0
    w1_ref: (Fp, W)    bf16  theta_1
    b_ref : (1, W)     f32   bias
    o_ref : (tm, W)          output row tile
    acc_ref:(tm, Fp)   f32   accumulator for (L_hat @ x)[rows]
    """
    i = pl.program_id(0)
    k = pl.program_id(1)
    nk = pl.num_programs(1)

    @pl.when(k == 0)
    def _():
        acc_ref[...] = jnp.zeros_like(acc_ref)

    # Partial Chebyshev T1 term: L[rows, k-chunk] @ x[k-chunk, :]
    xk = x_ref[pl.ds(pl.multiple_of(k * tk, tk), tk), :]               # (tk, Fp)
    acc_ref[...] += jnp.dot(l_ref[...], xk,
                            preferred_element_type=jnp.float32)

    @pl.when(k == nk - 1)
    def _():
        # T0 term rows for this tile.
        x_tile = x_ref[pl.ds(pl.multiple_of(i * tm, tm), tm), :]       # (tm, Fp)
        out = jnp.dot(x_tile, w0_ref[...],
                      preferred_element_type=jnp.float32)
        out = out + jnp.dot(acc_ref[...].astype(jnp.bfloat16), w1_ref[...],
                            preferred_element_type=jnp.float32)
        out = out + b_ref[...]                                         # (tm, W) f32
        if mode == "relu":
            o_ref[...] = jnp.maximum(out, 0.0).astype(o_ref.dtype)
        else:  # "log_softmax"
            o_ref[...] = _masked_log_softmax(out, valid_cols).astype(o_ref.dtype)


def _cheb_layer(L_pad, x_pad, w0, w1, b, meta, *, mode, valid_cols, out_dtype):
    Np, tm, tk = meta["Np"], meta["tm"], meta["tk"]
    Fp = x_pad.shape[1]
    width = w0.shape[1]
    vmem_cap = meta["vmem_cap"]
    n_i = Np // tm
    n_k = Np // tk

    kernel = functools.partial(_cheb_layer_kernel, tm=tm, tk=tk,
                               mode=mode, valid_cols=valid_cols)

    out_itemsize = jnp.dtype(out_dtype).itemsize
    cost = pl.CostEstimate(
        flops=int(2 * Np * Np * Fp + 2 * 2 * Np * Fp * width),
        transcendentals=int(Np * width) if mode == "log_softmax" else 0,
        bytes_accessed=int(Np * Np * 2 + Np * Fp * 2 + 2 * Fp * width * 2
                           + width * 4 + Np * width * out_itemsize),
    )

    est = (2 * tm * tk * 2          # L tile, double buffered, bf16
           + Np * Fp * 2            # resident x / h (single buffered)
           + 2 * Fp * width * 2     # W0 + W1 (single buffered)
           + width * 4              # bias
           + 2 * tm * width * 4     # output tile, double buffered
           + tm * Fp * 4)           # f32 accumulator scratch
    vmem_limit = int(min(vmem_cap * 3 // 4,
                         max(32 * 1024 * 1024, 2 * est)))

    return pl.pallas_call(
        kernel,
        out_shape=jax.ShapeDtypeStruct((Np, width), out_dtype),
        grid=(n_i, n_k),
        in_specs=[
            pl.BlockSpec((tm, tk), lambda i, k: (i, k)),               # L tile
            _block_spec((Np, Fp), lambda i, k: (0, 0), buffers=1),     # x / h
            _block_spec((Fp, width), lambda i, k: (0, 0), buffers=1),  # W0
            _block_spec((Fp, width), lambda i, k: (0, 0), buffers=1),  # W1
            _block_spec((1, width), lambda i, k: (0, 0), buffers=1),   # bias
        ],
        out_specs=pl.BlockSpec((tm, width), lambda i, k: (i, 0)),
        scratch_shapes=[pltpu.VMEM((tm, Fp), jnp.float32)],
        compiler_params=pltpu.CompilerParams(
            dimension_semantics=("parallel", "arbitrary"),
            vmem_limit_bytes=vmem_limit),
        cost_estimate=cost,
    )(L_pad, x_pad, w0, w1, b)


def _tiled_forward(arrays, meta):
    (L_pad, x_pad, w10p, w11p, b1p, w20p, w21p, b2p) = arrays
    h = _cheb_layer(L_pad, x_pad, w10p, w11p, b1p, meta,
                    mode="relu", valid_cols=meta["H"], out_dtype=jnp.bfloat16)
    # dropout(training=False) -> identity.
    out = _cheb_layer(L_pad, h, w20p, w21p, b2p, meta,
                      mode="log_softmax", valid_cols=meta["C"],
                      out_dtype=jnp.float32)
    return out


# ----------------------------------------------------------------------------
# Public API
# ----------------------------------------------------------------------------
def prepare_chebnet(L_hat, x, params):
    """Pad / cast graph constants ONCE (hoisted out of the forward path)."""
    w10, w11, b1, w20, w21, b2 = params
    N, F = x.shape
    H = w10.shape[1]
    C = w20.shape[1]
    LANE = 128

    vmem_cap = _vmem_capacity_bytes()
    Fp = _round_up(F, LANE)
    Hp = _round_up(H, LANE)
    Cp = _round_up(C, LANE)
    tm, tk, Np = _choose_tiles(N, vmem_cap)

    # bf16 MXU inputs (f32 accumulation in-kernel); zero padding everywhere,
    # so padded L rows/cols and padded feature lanes never contaminate
    # valid outputs.
    L_pad = _pad2(L_hat, Np, Np).astype(jnp.bfloat16)
    x_pad = _pad2(x, Np, Fp).astype(jnp.bfloat16)
    w10p = _pad2(w10, Fp, Hp).astype(jnp.bfloat16)
    w11p = _pad2(w11, Fp, Hp).astype(jnp.bfloat16)
    w20p = _pad2(w20, Hp, Cp).astype(jnp.bfloat16)
    w21p = _pad2(w21, Hp, Cp).astype(jnp.bfloat16)
    b1p = _pad2(jnp.reshape(b1, (1, -1)), 1, Hp).astype(jnp.float32)
    b2p = _pad2(jnp.reshape(b2, (1, -1)), 1, Cp).astype(jnp.float32)

    arrays = (L_pad, x_pad, w10p, w11p, b1p, w20p, w21p, b2p)
    meta = dict(N=N, F=F, H=H, C=C, Fp=Fp, Hp=Hp, Cp=Cp, Np=Np,
                tm=tm, tk=tk, vmem_cap=vmem_cap)
    return arrays, meta


def chebnet_forward_prepared(arrays, meta, *, force_tiled=False):
    """Full ChebNet forward: relu(cheb1(x)) -> cheb2 -> log_softmax."""
    Np, Fp, Hp, Cp = meta["Np"], meta["Fp"], meta["Hp"], meta["Cp"]
    vmem_cap = meta["vmem_cap"]

    # Estimated VMEM footprint of the fused path (L + x + out + f32 temps).
    fused_bytes = (Np * Np * 2 + Np * Fp * 2 + Np * Cp * 4
                   + 4 * Np * max(Fp, Hp, Cp) * 4
                   + 2 * Fp * Hp * 2 + 2 * Hp * Cp * 2)

    if (not force_tiled) and fused_bytes <= int(0.4 * vmem_cap):
        out = _fused_forward(arrays, meta, fused_bytes)
    else:
        out = _tiled_forward(arrays, meta)
    return out[:meta["N"], :meta["C"]]


def chebnet_forward(L_hat, x, params, *, force_tiled=False):
    """Convenience one-shot wrapper (prepare + forward)."""
    arrays, meta = prepare_chebnet(L_hat, x, params)
    return chebnet_forward_prepared(arrays, meta, force_tiled=force_tiled)


def reference_forward(L_hat, x, params):
    w10, w11, b1, w20, w21, b2 = params
    h = jnp.maximum(x @ w10 + (L_hat @ x) @ w11 + b1, 0.0)
    out = h @ w20 + (L_hat @ h) @ w21 + b2
    return jax.nn.log_softmax(out, axis=1)


# ----------------------------------------------------------------------------
# Demo / self-test
# ----------------------------------------------------------------------------
if __name__ == "__main__":
    # Small, module-consistent shapes (multiple row tiles on the tiled path).
    N = 256         # number of graph nodes
    num_dim = 16    # input feature dim
    hidden = 16     # ChebConv(num_dim, 16)
    num_class = 8   # ChebConv(16, num_class)

    key = jax.random.PRNGKey(0)
    k_x, k_a, k1, k2, k3, k4 = jax.random.split(key, 6)

    # Node features.
    x = jax.random.normal(k_x, (N, num_dim), dtype=jnp.float32)

    # Random symmetric adjacency (no self loops), then the K=2 Chebyshev
    # scaled Laplacian with lambda_max=2:  L_hat = -D^{-1/2} A D^{-1/2}.
    a_rand = jax.random.uniform(k_a, (N, N))
    A = (a_rand + a_rand.T > 1.4).astype(jnp.float32)
    A = A * (1.0 - jnp.eye(N, dtype=jnp.float32))
    deg = jnp.sum(A, axis=1)
    dinv_sqrt = jnp.where(deg > 0, 1.0 / jnp.sqrt(jnp.maximum(deg, 1e-12)), 0.0)
    L_hat = -(dinv_sqrt[:, None] * A * dinv_sqrt[None, :])

    # Deterministic parameter init (glorot-ish; ChebConv bias -> zeros).
    def glorot(k, shape):
        lim = jnp.sqrt(6.0 / (shape[0] + shape[1]))
        return jax.random.uniform(k, shape, jnp.float32, -lim, lim)

    w10 = glorot(k1, (num_dim, hidden))    # conv1 theta_0
    w11 = glorot(k2, (num_dim, hidden))    # conv1 theta_1
    b1 = jnp.zeros((1, hidden), jnp.float32)
    w20 = glorot(k3, (hidden, num_class))  # conv2 theta_0
    w21 = glorot(k4, (hidden, num_class))  # conv2 theta_1
    b2 = jnp.zeros((1, num_class), jnp.float32)
    params = (w10, w11, b1, w20, w21, b2)

    # Graph constants padded/cast ONCE, reused across forwards.
    arrays, meta = prepare_chebnet(L_hat, x, params)

    # Fused (L-resident, L read once) and tiled (row x K grid) paths.
    out_fused = jax.block_until_ready(chebnet_forward_prepared(arrays, meta))
    out_tiled = jax.block_until_ready(
        chebnet_forward_prepared(arrays, meta, force_tiled=True))

    ref = reference_forward(L_hat, x, params)
    assert out_fused.shape == (N, num_class)
    assert out_tiled.shape == (N, num_class)
    # bf16 MXU inputs with f32 accumulation -> loosened tolerance vs f32 ref.
    assert jnp.allclose(out_fused, ref, atol=5e-2, rtol=5e-2), "fused mismatch"
    assert jnp.allclose(out_tiled, ref, atol=5e-2, rtol=5e-2), "tiled mismatch"

    print("KERNEL_OK")
</pallas_src>

<mosaic_0001>
module attributes {stable_mosaic.version = 11 : i64} {
  func.func @_fused_kernel(%arg0: memref<256x256xbf16, #tpu.memory_space<vmem>>, %arg1: memref<256x128xbf16, #tpu.memory_space<vmem>>, %arg2: memref<128x128xbf16, #tpu.memory_space<vmem>>, %arg3: memref<128x128xbf16, #tpu.memory_space<vmem>>, %arg4: memref<1x128xf32, #tpu.memory_space<vmem>>, %arg5: memref<128x128xbf16, #tpu.memory_space<vmem>>, %arg6: memref<128x128xbf16, #tpu.memory_space<vmem>>, %arg7: memref<1x128xf32, #tpu.memory_space<vmem>>, %arg8: memref<256x128xf32, #tpu.memory_space<vmem>>) attributes {dimension_semantics = [], scalar_prefetch = 0 : i64, scratch_operands = 0 : i64, tpu.core_type = #tpu.core_type<tc>} {
    %c0 = arith.constant 0 : index
    %c0_0 = arith.constant 0 : index
    %0 = vector.load %arg0[%c0, %c0_0] : memref<256x256xbf16, #tpu.memory_space<vmem>>, vector<256x256xbf16>
    %c0_1 = arith.constant 0 : index
    %c0_2 = arith.constant 0 : index
    %1 = vector.load %arg1[%c0_1, %c0_2] : memref<256x128xbf16, #tpu.memory_space<vmem>>, vector<256x128xbf16>
    %cst = arith.constant dense<0.000000e+00> : vector<256x128xf32>
    %2 = tpu.matmul %0, %1, %cst {dimension_numbers = #tpu.dot_dimension_numbers<[1], [0], [0], [1], [0, 0, 1, 1], [], []>} : vector<256x256xbf16>, vector<256x128xbf16>, vector<256x128xf32> -> vector<256x128xf32>
    %c0_3 = arith.constant 0 : index
    %c0_4 = arith.constant 0 : index
    %3 = vector.load %arg2[%c0_3, %c0_4] : memref<128x128xbf16, #tpu.memory_space<vmem>>, vector<128x128xbf16>
    %cst_5 = arith.constant dense<0.000000e+00> : vector<256x128xf32>
    %4 = tpu.matmul %1, %3, %cst_5 {dimension_numbers = #tpu.dot_dimension_numbers<[1], [0], [0], [1], [0, 0, 1, 1], [], []>} : vector<256x128xbf16>, vector<128x128xbf16>, vector<256x128xf32> -> vector<256x128xf32>
    %5 = arith.truncf %2 : vector<256x128xf32> to vector<256x128xbf16>
    %c0_6 = arith.constant 0 : index
    %c0_7 = arith.constant 0 : index
    %6 = vector.load %arg3[%c0_6, %c0_7] : memref<128x128xbf16, #tpu.memory_space<vmem>>, vector<128x128xbf16>
    %cst_8 = arith.constant dense<0.000000e+00> : vector<256x128xf32>
    %7 = tpu.matmul %5, %6, %cst_8 {dimension_numbers = #tpu.dot_dimension_numbers<[1], [0], [0], [1], [0, 0, 1, 1], [], []>} : vector<256x128xbf16>, vector<128x128xbf16>, vector<256x128xf32> -> vector<256x128xf32>
    %8 = arith.addf %4, %7 : vector<256x128xf32>
    %c0_9 = arith.constant 0 : index
    %c0_10 = arith.constant 0 : index
    %9 = vector.load %arg4[%c0_9, %c0_10] : memref<1x128xf32, #tpu.memory_space<vmem>>, vector<1x128xf32>
    %10 = vector.broadcast %9 : vector<1x128xf32> to vector<256x128xf32>
    %11 = arith.addf %8, %10 : vector<256x128xf32>
    %cst_11 = arith.constant 0.000000e+00 : f32
    %12 = vector.broadcast %cst_11 : f32 to vector<256x128xf32>
    %13 = arith.maximumf %11, %12 : vector<256x128xf32>
    %14 = arith.truncf %13 : vector<256x128xf32> to vector<256x128xbf16>
    %cst_12 = arith.constant dense<0.000000e+00> : vector<256x128xf32>
    %15 = tpu.matmul %0, %14, %cst_12 {dimension_numbers = #tpu.dot_dimension_numbers<[1], [0], [0], [1], [0, 0, 1, 1], [], []>} : vector<256x256xbf16>, vector<256x128xbf16>, vector<256x128xf32> -> vector<256x128xf32>
    %c0_13 = arith.constant 0 : index
    %c0_14 = arith.constant 0 : index
    %16 = vector.load %arg5[%c0_13, %c0_14] : memref<128x128xbf16, #tpu.memory_space<vmem>>, vector<128x128xbf16>
    %cst_15 = arith.constant dense<0.000000e+00> : vector<256x128xf32>
    %17 = tpu.matmul %14, %16, %cst_15 {dimension_numbers = #tpu.dot_dimension_numbers<[1], [0], [0], [1], [0, 0, 1, 1], [], []>} : vector<256x128xbf16>, vector<128x128xbf16>, vector<256x128xf32> -> vector<256x128xf32>
    %18 = arith.truncf %15 : vector<256x128xf32> to vector<256x128xbf16>
    %c0_16 = arith.constant 0 : index
    %c0_17 = arith.constant 0 : index
    %19 = vector.load %arg6[%c0_16, %c0_17] : memref<128x128xbf16, #tpu.memory_space<vmem>>, vector<128x128xbf16>
    %cst_18 = arith.constant dense<0.000000e+00> : vector<256x128xf32>
    %20 = tpu.matmul %18, %19, %cst_18 {dimension_numbers = #tpu.dot_dimension_numbers<[1], [0], [0], [1], [0, 0, 1, 1], [], []>} : vector<256x128xbf16>, vector<128x128xbf16>, vector<256x128xf32> -> vector<256x128xf32>
    %21 = arith.addf %17, %20 : vector<256x128xf32>
    %c0_19 = arith.constant 0 : index
    %c0_20 = arith.constant 0 : index
    %22 = vector.load %arg7[%c0_19, %c0_20] : memref<1x128xf32, #tpu.memory_space<vmem>>, vector<1x128xf32>
    %23 = vector.broadcast %22 : vector<1x128xf32> to vector<256x128xf32>
    %24 = arith.addf %21, %23 : vector<256x128xf32>
    %25 = tpu.iota {dimensions = array<i32: 1>} : vector<256x128xi32>
    %c8_i32 = arith.constant 8 : i32
    %26 = vector.broadcast %c8_i32 : i32 to vector<256x128xi32>
    %27 = arith.cmpi slt, %25, %26 : vector<256x128xi32>
    %cst_21 = arith.constant -1.000000e+30 : f32
    %28 = vector.broadcast %cst_21 : f32 to vector<256x128xf32>
    %29 = arith.select %27, %24, %28 : vector<256x128xi1>, vector<256x128xf32>
    %cst_22 = arith.constant dense<0xFF800000> : vector<256xf32>
    %30 = vector.multi_reduction <maximumf>, %29, %cst_22 [1] : vector<256x128xf32> to vector<256xf32>
    %31 = vector.shape_cast %30 : vector<256xf32> to vector<256x1xf32>
    %32 = vector.broadcast %31 : vector<256x1xf32> to vector<256x128xf32>
    %33 = arith.subf %29, %32 : vector<256x128xf32>
    %34 = math.exp %33 : vector<256x128xf32>
    %cst_23 = arith.constant dense<0.000000e+00> : vector<256xf32>
    %35 = vector.multi_reduction <add>, %34, %cst_23 [1] : vector<256x128xf32> to vector<256xf32>
    %36 = vector.shape_cast %35 : vector<256xf32> to vector<256x1xf32>
    %37 = math.log %36 : vector<256x1xf32>
    %38 = vector.broadcast %37 : vector<256x1xf32> to vector<256x128xf32>
    %39 = arith.subf %33, %38 : vector<256x128xf32>
    %c0_24 = arith.constant 0 : index
    %c0_25 = arith.constant 0 : index
    %40 = vector.load %arg8[%c0_24, %c0_25] : memref<256x128xf32, #tpu.memory_space<vmem>>, vector<256x128xf32>
    tpu.vector_store %arg8[%c0_24, %c0_25], %39 {strides = array<i32>} : memref<256x128xf32, #tpu.memory_space<vmem>>, vector<256x128xf32>,
    return
  }
}

</mosaic_0001>

<bundles_post_ra>
// kernel: tpu_custom_call.1
= control target key start
LH: loop header
LB: loop body
LE: loop exit
PB: predicated region body
PF: predicated region fallthrough
CT: control target
= control target key end

     0   :  { %13 = vsyncpa [#allocation3], 0  ;;  %s4100_s0 = inlined_call_operand.hbm [shape: bf16[256,256], index: 0, kind: input, shape index: {}]   ;;  %s4101_s1 = inlined_call_operand.hbm [shape: bf16[256,128], index: 1, kind: input, shape index: {}]   ;;  %s4102_s2 = inlined_call_operand.hbm [shape: bf16[128,128], index: 2, kind: input, shape index: {}]   ;;  %s4103_s3 = inlined_call_operand.hbm [shape: bf16[128,128], index: 3, kind: input, shape index: {}]   ;;  %s4104_s4 = inlined_call_operand.vmem [shape: f32[1,128], index: 4, kind: input, shape index: {}]   ;;  %s4105_s5 = inlined_call_operand.hbm [shape: bf16[128,128], index: 5, kind: input, shape index: {}]   ;;  %s4106_s6 = inlined_call_operand.hbm [shape: bf16[128,128], index: 6, kind: input, shape index: {}]   ;;  %s4107_s7 = inlined_call_operand.vmem [shape: f32[1,128], index: 7, kind: input, shape index: {}]   ;;  %s4108_s8 = inlined_call_operand.hbm [shape: f32[256,128], index: 8, kind: output, shape index: {}]  }
   0x1   :  { %14 = vsyncpa [#allocation6], 0 }
   0x2   :  { %15 = vsyncpa [#allocation9], 0 }
   0x3   :  { %16 = vsyncpa [#allocation12], 0 }
   0x4   :  { %17 = vsyncpa [#allocation4], 0  ;;  %s3202_s27 = smov [#allocation5]  }
   0x5   :  { %s35_s28 = sshll.u32 %s3202_s27, 4  ;;  %s36_s28 = int_to_ptr.vmem [resolvable:$true] %s35_s28 }
   0x6   :  { %s3060_s29 = scalar_lea.vmem %s36_s28, 2048  ;;  %p3065_p1 = scmp.lt.s32.totalorder %s36_s28, %s36_s28 }
   0x7   :  { %p3061_p0 = scmp.ne.s32.totalorder %s36_s28, %s3060_s29  ;;  %p3066_p2 = scmp.lt.s32.totalorder %s3060_s29, %s3060_s29 }
   0x9   :  { %p3067_p3 = por %p3066_p2, %p3065_p1 }
   0xb   :  { %p3068_p4 = pnand %p3067_p3, %p3061_p0 }
   0xd   :  { %3071 = shalt.err (!%p3068_p4)
}
   0xe   :  { %s3203_s30 = smov 64   ;;  %s3204_s9 = smov 4  }
   0xf   :  { %41 = dma.hbm_to_vmem [thread:$0]  %s4101_s1, 2048, %s36_s28, [#allocation6], %s3203_s30, %s3203_s30, %s3204_s9  }
  0x10   :  { %s3205_s12 = smov [#allocation8]   ;;  %s3206_s14 = smov [#allocation2]  }
  0x11   :  { %s59_s13 = sshll.u32 %s3205_s12, 4  ;;  %s23_s15 = sshll.u32 %s3206_s14, 4  ;;  %s60_s13 = int_to_ptr.vmem [resolvable:$true] %s59_s13  ;;  %s24_s15 = int_to_ptr.vmem [resolvable:$true] %s23_s15 }
  0x12   :  { %s3080_s16 = scalar_lea.vmem %s60_s13, 1024  ;;  %p3085_p6 = scmp.lt.s32.totalorder %s60_s13, %s60_s13 }
  0x13   :  { %p3081_p5 = scmp.ne.s32.totalorder %s60_s13, %s3080_s16  ;;  %p3086_p7 = scmp.lt.s32.totalorder %s3080_s16, %s3080_s16 }
  0x15   :  { %p3087_p8 = por %p3086_p7, %p3085_p6 }
  0x17   :  { %p3088_p9 = pnand %p3087_p8, %p3081_p5 }
  0x19   :  { %3091 = shalt.err (!%p3088_p9)
}
  0x1a   :  { %65 = dma.hbm_to_vmem [thread:$0]  %s4103_s3, 1024, %s60_s13, [#allocation9], %s3203_s30, %s3203_s30, %s3204_s9  }
  0x1b   :  { %s3100_s1 = scalar_lea.vmem %s24_s15, 4096  ;;  %p3105_p11 = scmp.lt.s32.totalorder %s24_s15, %s24_s15 }
  0x1c   :  { %p3101_p10 = scmp.ne.s32.totalorder %s24_s15, %s3100_s1  ;;  %p3106_p12 = scmp.lt.s32.totalorder %s3100_s1, %s3100_s1 }
  0x1e   :  { %p3107_p13 = por %p3106_p12, %p3105_p11 }
  0x20   :  { %p3108_p0 = pnand %p3107_p13, %p3101_p10 }
  0x22   :  { %3111 = shalt.err (!%p3108_p0)
}
  0x23   :  { %s3207_s19 = smov 128   ;;  %s3208_s20 = smov 8  }
  0x24   :  { %29 = dma.hbm_to_vmem [thread:$0]  %s4100_s0, 4096, %s24_s15, [#allocation3], %s3207_s19, %s3207_s19, %s3208_s20  }
  0x25   :  { %s3209_s23 = smov [#allocation7]   ;;  %s3210_s3 = smov [#allocation10]  }
  0x26   :  { %s47_s24 = sshll.u32 %s3209_s23, 4  ;;  %s73_s25 = sshll.u32 %s3210_s3, 4  ;;  %s48_s24 = int_to_ptr.vmem [resolvable:$true] %s47_s24  ;;  %s74_s25 = int_to_ptr.vmem [resolvable:$true] %s73_s25 }
  0x27   :  { %s3120_s26 = scalar_lea.vmem %s48_s24, 1024  ;;  %p3125_p2 = scmp.lt.s32.totalorder %s48_s24, %s48_s24 }
  0x28   :  { %p3121_p1 = scmp.ne.s32.totalorder %s48_s24, %s3120_s26  ;;  %p3126_p3 = scmp.lt.s32.totalorder %s3120_s26, %s3120_s26 }
  0x2a   :  { %p3127_p4 = por %p3126_p3, %p3125_p2 }
  0x2c   :  { %p3128_p5 = pnand %p3127_p4, %p3121_p1 }
  0x2e   :  { %3131 = shalt.err (!%p3128_p5)
}
  0x2f   :  { %53 = dma.hbm_to_vmem [thread:$0]  %s4102_s2, 1024, %s48_s24, [#allocation6], %s3203_s30, %s3203_s30, %s3204_s9  }
  0x30   :  { %s3140_s0 = scalar_lea.vmem %s74_s25, 1024  ;;  %p3145_p7 = scmp.lt.s32.totalorder %s74_s25, %s74_s25 }
  0x31   :  { %p3141_p6 = scmp.ne.s32.totalorder %s74_s25, %s3140_s0  ;;  %p3146_p8 = scmp.lt.s32.totalorder %s3140_s0, %s3140_s0 }
  0x33   :  { %p3147_p9 = por %p3146_p8, %p3145_p7 }
  0x35   :  { %p3148_p10 = pnand %p3147_p9, %p3141_p6 }
  0x37   :  { %3151 = shalt.err (!%p3148_p10)
}
  0x38   :  { %79 = dma.hbm_to_vmem [thread:$0]  %s4105_s5, 1024, %s74_s25, [#allocation9], %s3203_s30, %s3203_s30, %s3204_s9  }
  0x39   :  { %s3211_s11 = smov [#allocation11]  }
  0x3a   :  { %s85_s12 = sshll.u32 %s3211_s11, 4  ;;  %s86_s12 = int_to_ptr.vmem [resolvable:$true] %s85_s12 }
  0x3b   :  { %s3160_s13 = scalar_lea.vmem %s86_s12, 1024  ;;  %p3165_p12 = scmp.lt.s32.totalorder %s86_s12, %s86_s12 }
  0x3c   :  { %p3161_p11 = scmp.ne.s32.totalorder %s86_s12, %s3160_s13  ;;  %p3166_p13 = scmp.lt.s32.totalorder %s3160_s13, %s3160_s13 }
  0x3e   :  { %p3167_p0 = por %p3166_p13, %p3165_p12 }
  0x40   :  { %p3168_p1 = pnand %p3167_p0, %p3161_p11 }
  0x42   :  { %3171 = shalt.err (!%p3168_p1)
}
  0x43   :  { %91 = dma.hbm_to_vmem [thread:$0]  %s4106_s6, 1024, %s86_s12, [#allocation12], %s3203_s30, %s3203_s30, %s3204_s9  }
  0x44   :  { %3192 = dma.done.wait [#allocation3], 4096  }
  0x45   :  { %3193 = vsyncadd [#allocation3], 4294963200 }
  0x46   :  { %3194 = dma.done.wait [#allocation6], 3072  }
  0x47   :  { %3195 = vsyncadd [#allocation6], 4294964224 }
  0x48   :  { %3196 = dma.done.wait [#allocation9], 2048  }
  0x49   :  { %3197 = vsyncadd [#allocation9], 4294965248 }
  0x4a   :  { %3198 = dma.done.wait [#allocation12], 1024  }
  0x4b   :  { %3199 = vsyncadd [#allocation12], 4294966272  ;;  %v3294_v0 = vld [vmem:[#allocation5 + $0x78] sm:$0xff]   ;;  %v3299_v2 = vld [vmem:[#allocation5 + $0x70] sm:$0xff]  }
  0x4c   :  { %v3296_v1 = vld [vmem:[#allocation5 + $0x38] sm:$0xff]   ;;  %2302 = vmatprep.subr.bf16.mxu0 %v3294_v0  ;;  %v3302_v3 = vld [vmem:[#allocation5 + $0x30] sm:$0xff]   ;;  %v3305_v4 = vld [vmem:[#allocation5 + $0x68] sm:$0xff]  }
  0x4d   :  { %2303 = vmatpush3.bf16.msra.mxu0 %v3296_v1  ;;  %v3308_v5 = vld [vmem:[#allocation5 + $0x28] sm:$0xff]   ;;  %v3311_v6 = vld [vmem:[#allocation5 + $0x60] sm:$0xff]   ;;  %v3317_v8 = vld [vmem:[#allocation5 + $0x58] sm:$0xff]  }
  0x4e   :  { %2304 = vmatprep.subr.bf16.mxu0 %v3299_v2  ;;  %v3314_v7 = vld [vmem:[#allocation5 + $0x20] sm:$0xff]   ;;  %v3320_v9 = vld [vmem:[#allocation5 + $0x18] sm:$0xff]   ;;  %v3323_v10 = vld [vmem:[#allocation5 + $0x50] sm:$0xff]  }
  0x4f   :  { %v3325_v11 = vld [vmem:[#allocation2 + $0x4] ss:$8 sps:$4 sm:$0xff]   ;;  %v3328_v12 = vld [vmem:[#allocation5 + $0x10] sm:$0xff]   ;;  %v2841_v17 = vld [vmem:[#allocation2] ss:$8 sps:$4 sm:$0xff]  }
  0x50   :  { %465 = vmatprep.mubr.bf16.mxu0 %v3325_v11  ;;  %v3332_v13 = vld [vmem:[#allocation5 + $0x48] sm:$0xff]   ;;  %v3338_v15 = vld [vmem:[#allocation5 + $0x40] sm:$0xff]   ;;  %v2844_v18 = vld [vmem:[#allocation2 + $0x14] ss:$8 sps:$4 sm:$0xff]  }
  0x51   :  { %2305 = vmatpush3.bf16.msra.mxu0 %v3302_v3  ;;  %v3335_v14 = vld [vmem:[#allocation5 + $0x8] sm:$0xff]   ;;  %v3341_v16 = vld [vmem:[#allocation5] sm:$0xff]   ;;  %v2846_v19 = vld [vmem:[#allocation2 + $0x10] ss:$8 sps:$4 sm:$0xff]  }
  0x52   :  { %2306 = vmatprep.subr.bf16.mxu0 %v3305_v4  ;;  %v3345_v20 = vld [vmem:[#allocation2 + $0x24] ss:$8 sps:$4 sm:$0xff]   ;;  %v2889_v21 = vld [vmem:[#allocation8 + $0x38] sm:$0xff]   ;;  %v2890_v22 = vld [vmem:[#allocation8 + $0x30] sm:$0xff]  }
  0x53   :  { %2622 = vmatprep.subr.bf16.mxu1 %v2889_v21  ;;  %v2891_v23 = vld [vmem:[#allocation8 + $0x28] sm:$0xff]   ;;  %v2892_v25 = vld [vmem:[#allocation8 + $0x20] sm:$0xff]   ;;  %v3350_v26 = vld [vmem:[#allocation2 + $0x34] ss:$8 sps:$4 sm:$0xff]  }
  0x54   :  { %2623 = vmatpush3.bf16.msra.mxu1 %v2889_v21  ;;  %v3348_v24 = vld [vmem:[#allocation2 + $0x20] ss:$8 sps:$4 sm:$0xff]   ;;  %v3354_v27 = vld [vmem:[#allocation2 + $0x30] ss:$8 sps:$4 sm:$0xff]   ;;  %v3356_v28 = vld [vmem:[#allocation2 + $0x44] ss:$8 sps:$4 sm:$0xff]  }
  0x55   :  { %2307 = vmatpush3.bf16.msra.mxu0 %v3308_v5  ;;  %2624 = vmatprep.subr.bf16.mxu1 %v2890_v22  ;;  %4134 = vst [vmem:[#allocation19_spill] sm:$0xff] %v3354_v27  ;;  %4135 = vst [vmem:[#allocation20_spill] sm:$0xff] %v3356_v28  ;;  %v3360_v29 = vld [vmem:[#allocation2 + $0x40] ss:$8 sps:$4 sm:$0xff]   ;;  %v3362_v30 = vld [vmem:[#allocation2 + $0x54] ss:$8 sps:$4 sm:$0xff]  }
  0x56   :  { %2308 = vmatprep.subr.bf16.mxu0 %v3311_v6  ;;  %4136 = vst [vmem:[#allocation21_spill] sm:$0xff] %v3360_v29  ;;  %4137 = vst [vmem:[#allocation22_spill] sm:$0xff] %v3362_v30  ;;  %v3366_v31 = vld [vmem:[#allocation2 + $0x50] ss:$8 sps:$4 sm:$0xff]   ;;  %v3368_v32 = vld [vmem:[#allocation2 + $0x64] ss:$8 sps:$4 sm:$0xff]  }
  0x57   :  { %4138 = vst [vmem:[#allocation23_spill] sm:$0xff] %v3366_v31  ;;  %4139 = vst [vmem:[#allocation24_spill] sm:$0xff] %v3368_v32  ;;  %v3372_v33 = vld [vmem:[#allocation2 + $0x60] ss:$8 sps:$4 sm:$0xff]   ;;  %v3374_v34 = vld [vmem:[#allocation2 + $0x74] ss:$8 sps:$4 sm:$0xff]  }
  0x58   :  { %2625 = vmatpush3.bf16.msra.mxu1 %v2890_v22  ;;  %4140 = vst [vmem:[#allocation25_spill] sm:$0xff] %v3372_v33  ;;  %4141 = vst [vmem:[#allocation26_spill] sm:$0xff] %v3374_v34  ;;  %v3378_v35 = vld [vmem:[#allocation2 + $0x70] ss:$8 sps:$4 sm:$0xff]   ;;  %v3380_v36 = vld [vmem:[#allocation2 + $0x84] ss:$8 sps:$4 sm:$0xff]  }
  0x59   :  { %2309 = vmatpush3.bf16.msra.mxu0 %v3314_v7  ;;  %2626 = vmatprep.subr.bf16.mxu1 %v2891_v23  ;;  %4142 = vst [vmem:[#allocation27_spill] sm:$0xff] %v3378_v35  ;;  %4143 = vst [vmem:[#allocation28_spill] sm:$0xff] %v3380_v36  ;;  %v3384_v37 = vld [vmem:[#allocation2 + $0x80] ss:$8 sps:$4 sm:$0xff]   ;;  %v3386_v38 = vld [vmem:[#allocation2 + $0x94] ss:$8 sps:$4 sm:$0xff]  }
  0x5a   :  { %2310 = vmatprep.subr.bf16.mxu0 %v3317_v8  ;;  %4144 = vst [vmem:[#allocation29_spill] sm:$0xff] %v3384_v37  ;;  %4145 = vst [vmem:[#allocation30_spill] sm:$0xff] %v3386_v38  ;;  %v2893_v39 = vld [vmem:[#allocation8 + $0x18] sm:$0xff]   ;;  %v3392_v41 = vld [vmem:[#allocation2 + $0xa4] ss:$8 sps:$4 sm:$0xff]  }
  0x5b   :  { %v3390_v40 = vld [vmem:[#allocation2 + $0x90] ss:$8 sps:$4 sm:$0xff]   ;;  %4147 = vst [vmem:[#allocation32_spill] sm:$0xff] %v3392_v41  ;;  %v2895_v43 = vld [vmem:[#allocation8 + $0x8] sm:$0xff]   ;;  %v3398_v45 = vld [vmem:[#allocation2 + $0xb4] ss:$8 sps:$4 sm:$0xff]  }
  0x5c   :  { %2627 = vmatpush3.bf16.msra.mxu1 %v2891_v23  ;;  %4146 = vst [vmem:[#allocation31_spill] sm:$0xff] %v3390_v40  ;;  %v2894_v42 = vld [vmem:[#allocation8 + $0x10] sm:$0xff]   ;;  %v3396_v44 = vld [vmem:[#allocation2 + $0xa0] ss:$8 sps:$4 sm:$0xff]   ;;  %4149 = vst [vmem:[#allocation34_spill] sm:$0xff] %v3398_v45 }
  0x5d   :  { %2311 = vmatpush3.bf16.msra.mxu0 %v3320_v9  ;;  %2628 = vmatprep.subr.bf16.mxu1 %v2892_v25  ;;  %4148 = vst [vmem:[#allocation33_spill] sm:$0xff] %v3396_v44  ;;  %v2896_v46 = vld [vmem:[#allocation8] sm:$0xff]   ;;  %v3402_v47 = vld [vmem:[#allocation2 + $0xb0] ss:$8 sps:$4 sm:$0xff]   ;;  %v3410_v50 = vld [vmem:[#allocation2 + $0xd4] ss:$8 sps:$4 sm:$0xff]  }
  0x5e   :  { %2312 = vmatprep.subr.bf16.mxu0 %v3323_v10  ;;  %4150 = vst [vmem:[#allocation35_spill] sm:$0xff] %v3402_v47  ;;  %v3404_v48 = vld [vmem:[#allocation2 + $0xc4] ss:$8 sps:$4 sm:$0xff]   ;;  %v3408_v49 = vld [vmem:[#allocation2 + $0xc0] ss:$8 sps:$4 sm:$0xff]   ;;  %4153 = vst [vmem:[#allocation38_spill] sm:$0xff] %v3410_v50 }
  0x5f   :  { %4151 = vst [vmem:[#allocation36_spill] sm:$0xff] %v3404_v48  ;;  %4152 = vst [vmem:[#allocation37_spill] sm:$0xff] %v3408_v49  ;;  %v3414_v51 = vld [vmem:[#allocation2 + $0xd0] ss:$8 sps:$4 sm:$0xff]   ;;  %v3416_v52 = vld [vmem:[#allocation2 + $0xe4] ss:$8 sps:$4 sm:$0xff]  }
  0x60   :  { %2629 = vmatpush3.bf16.msra.mxu1 %v2892_v25  ;;  %4154 = vst [vmem:[#allocation39_spill] sm:$0xff] %v3414_v51  ;;  %4155 = vst [vmem:[#allocation40_spill] sm:$0xff] %v3416_v52  ;;  %v3420_v53 = vld [vmem:[#allocation2 + $0xe0] ss:$8 sps:$4 sm:$0xff]   ;;  %v3422_v54 = vld [vmem:[#allocation2 + $0xf4] ss:$8 sps:$4 sm:$0xff]  }
  0x61   :  { %2313 = vmatpush3.bf16.msra.mxu0 %v3328_v12  ;;  %2630 = vmatprep.subr.bf16.mxu1 %v2893_v39  ;;  %4156 = vst [vmem:[#allocation41_spill] sm:$0xff] %v3420_v53  ;;  %4157 = vst [vmem:[#allocation42_spill] sm:$0xff] %v3422_v54  ;;  %v3426_v55 = vld [vmem:[#allocation2 + $0xf0] ss:$8 sps:$4 sm:$0xff]  }
  0x62   :  { %2314 = vmatprep.subr.bf16.mxu0 %v3332_v13  ;;  %4158 = vst [vmem:[#allocation43_spill] sm:$0xff] %v3426_v55  ;;  %v2897_v56 = vld [vmem:[#allocation7 + $0x38] sm:$0xff]  }
  0x64   :  { %2631 = vmatpush3.bf16.msra.mxu1 %v2893_v39 }
  0x65   :  { %2315 = vmatpush3.bf16.msra.mxu0 %v3335_v14  ;;  %2632 = vmatprep.subr.bf16.mxu1 %v2894_v42 }
  0x66   :  { %2316 = vmatprep.subr.bf16.mxu0 %v3338_v15 }
  0x68   :  { %2633 = vmatpush3.bf16.msra.mxu1 %v2894_v42  ;;  %v2898_v42 = vld [vmem:[#allocation7 + $0x30] sm:$0xff]  }
  0x69   :  { %2317 = vmatpush3.bf16.msra.mxu0 %v3341_v16  ;;  %2634 = vmatprep.subr.bf16.mxu1 %v2895_v43 }
  0x6c   :  { %466 = vmatmul.mubr.bf16.vlgmr.msra.gmra.mxu0 %v2841_v17  ;;  %2635 = vmatpush3.bf16.msra.mxu1 %v2895_v43 }
  0x6d   :  { %473 = vmatprep.mubr.bf16.mxu0 %v2844_v18  ;;  %2636 = vmatprep.subr.bf16.mxu1 %v2896_v46 }
  0x70   :  { %2637 = vmatpush3.bf16.msra.mxu1 %v2896_v46  ;;  %v2899_v46 = vld [vmem:[#allocation7 + $0x28] sm:$0xff]  }
  0x71   :  { %2670 = vmatprep.subr.bf16.mxu1 %v2897_v56 }
  0x74   :  { %474 = vmatmul.mubr.bf16.gmra.mxu0 %v2846_v19 }
  0x75   :  { %481 = vmatprep.mubr.bf16.mxu0 %v3345_v20 }
  0x7c   :  { %482 = vmatmul.mubr.bf16.gmra.mxu0 %v3348_v24 }
  0x7d   :  { %489 = vmatprep.mubr.bf16.mxu0 %v3350_v26 }
  0x84   :  { %490 = vmatmul.mubr.bf16.gmra.mxu0 %v3354_v27 }
  0x85   :  { %497 = vmatprep.mubr.bf16.mxu0 %v3356_v28 }
  0x8c   :  { %498 = vmatmul.mubr.bf16.gmra.mxu0 %v3360_v29 }
  0x8d   :  { %505 = vmatprep.mubr.bf16.mxu0 %v3362_v30 }
  0x94   :  { %506 = vmatmul.mubr.bf16.gmra.mxu0 %v3366_v31 }
  0x95   :  { %513 = vmatprep.mubr.bf16.mxu0 %v3368_v32 }
  0x9c   :  { %514 = vmatmul.mubr.bf16.gmra.mxu0 %v3372_v33 }
  0x9d   :  { %521 = vmatprep.mubr.bf16.mxu0 %v3374_v34 }
  0xa4   :  { %522 = vmatmul.mubr.bf16.gmra.mxu0 %v3378_v35 }
  0xa5   :  { %529 = vmatprep.mubr.bf16.mxu0 %v3380_v36 }
  0xac   :  { %530 = vmatmul.mubr.bf16.gmra.mxu0 %v3384_v37 }
  0xad   :  { %537 = vmatprep.mubr.bf16.mxu0 %v3386_v38 }
  0xb4   :  { %538 = vmatmul.mubr.bf16.gmra.mxu0 %v3390_v40 }
  0xb5   :  { %545 = vmatprep.mubr.bf16.mxu0 %v3392_v41 }
  0xbc   :  { %546 = vmatmul.mubr.bf16.gmra.mxu0 %v3396_v44 }
  0xbd   :  { %553 = vmatprep.mubr.bf16.mxu0 %v3398_v45 }
  0xc4   :  { %554 = vmatmul.mubr.bf16.gmra.mxu0 %v3402_v47 }
  0xc5   :  { %561 = vmatprep.mubr.bf16.mxu0 %v3404_v48 }
  0xcc   :  { %562 = vmatmul.mubr.bf16.gmra.mxu0 %v3408_v49 }
  0xcd   :  { %569 = vmatprep.mubr.bf16.mxu0 %v3410_v50 }
  0xd4   :  { %570 = vmatmul.mubr.bf16.gmra.mxu0 %v3414_v51 }
  0xd5   :  { %577 = vmatprep.mubr.bf16.mxu0 %v3416_v52 }
  0xdc   :  { %578 = vmatmul.mubr.bf16.gmra.mxu0 %v3420_v53 }
  0xdd   :  { %585 = vmatprep.mubr.bf16.mxu0 %v3422_v54 }
  0xe4   :  { %586 = vmatmul.mubr.bf16.gmra.mxu0 %v3426_v55 }
  0xe5   :  { %1179 = vmatprep.mubr.bf16.mxu0 %v3325_v11 }
 0x12c   :  { %v2318_v57 = vpop.f32.mrf.mxu0 }
 0x12e   :  { %v2319_v58 = vpop.f32.mrf.mxu0 }
 0x12f   :  { %v2320_v61 = vadd.f32 %v2319_v58, %v2318_v57 }
 0x130   :  { %v2321_v59 = vpop.f32.mrf.mxu0 }
 0x132   :  { %v2322_v60 = vpop.f32.mrf.mxu0 }
 0x133   :  { %v2323_v62 = vadd.f32 %v2322_v60, %v2321_v59 }
 0x134   :  { %v2324_v63 = vpop.f32.mrf.mxu0 }
 0x135   :  { %v610_v17 = vpack.c.bf16 %v2323_v62, %v2320_v61  ;;  %v2900_v61 = vld [vmem:[#allocation7 + $0x20] sm:$0xff]  }
 0x136   :  { %v2325_v18 = vpop.f32.mrf.mxu0 }
 0x137   :  { %2638 = vmatprep.mubr.bf16.mxu1 %v610_v17  ;;  %v2326_v22 = vadd.f32 %v2325_v18, %v2324_v63  ;;  %v2901_v17 = vld [vmem:[#allocation7 + $0x18] sm:$0xff]  }
 0x138   :  { %v2327_v19 = vpop.f32.mrf.mxu0 }
 0x13a   :  { %v2328_v21 = vpop.f32.mrf.mxu0 }
 0x13b   :  { %v2329_v23 = vadd.f32 %v2328_v21, %v2327_v19 }
 0x13c   :  { %v2330_v25 = vpop.f32.mrf.mxu0 }
 0x13d   :  { %v611_v39 = vpack.c.bf16 %v2329_v23, %v2326_v22  ;;  %v2902_v23 = vld [vmem:[#allocation7 + $0x10] sm:$0xff]  }
 0x13e   :  { %v2331_v11 = vpop.f32.mrf.mxu0 }
 0x13f   :  { %2639 = vmatmul.mubr.bf16.vlgmr.msra.gmra.mxu1 %v611_v39  ;;  %v2332_v57 = vadd.f32 %v2331_v11, %v2330_v25  ;;  %v2903_v39 = vld [vmem:[#allocation7 + $0x8] sm:$0xff]  }
 0x140   :  { %v2333_v43 = vpop.f32.mrf.mxu0  ;;  %2671 = vmatpush3.bf16.msra.mxu1 %v2897_v56 }
 0x141   :  { %2672 = vmatprep.subr.bf16.mxu1 %v2898_v42 }
 0x142   :  { %v2334_v55 = vpop.f32.mrf.mxu0 }
 0x143   :  { %v2335_v58 = vadd.f32 %v2334_v55, %v2333_v43 }
 0x144   :  { %v2336_v59 = vpop.f32.mrf.mxu0  ;;  %2673 = vmatpush3.bf16.msra.mxu1 %v2898_v42 }
 0x145   :  { %v612_v60 = vpack.c.bf16 %v2335_v58, %v2332_v57  ;;  %2674 = vmatprep.subr.bf16.mxu1 %v2899_v46  ;;  %v2904_v58 = vld [vmem:[#allocation7] sm:$0xff]  }
 0x146   :  { %v2337_v62 = vpop.f32.mrf.mxu0 }
 0x147   :  { %2642 = vmatprep.mubr.bf16.mxu1 %v612_v60  ;;  %v2338_v19 = vadd.f32 %v2337_v62, %v2336_v59 }
 0x148   :  { %v2339_v63 = vpop.f32.mrf.mxu0  ;;  %2675 = vmatpush3.bf16.msra.mxu1 %v2899_v46 }
 0x149   :  { %2676 = vmatprep.subr.bf16.mxu1 %v2900_v61 }
 0x14a   :  { %v2340_v18 = vpop.f32.mrf.mxu0 }
 0x14b   :  { %v2341_v21 = vadd.f32 %v2340_v18, %v2339_v63 }
 0x14c   :  { %v2342_v56 = vpop.f32.mrf.mxu0  ;;  %2677 = vmatpush3.bf16.msra.mxu1 %v2900_v61 }
 0x14d   :  { %v613_v22 = vpack.c.bf16 %v2341_v21, %v2338_v19  ;;  %2678 = vmatprep.subr.bf16.mxu1 %v2901_v17 }
 0x14e   :  { %v2343_v55 = vpop.f32.mrf.mxu0 }
 0x14f   :  { %2643 = vmatmul.mubr.bf16.gmra.mxu1 %v613_v22  ;;  %v2344_v11 = vadd.f32 %v2343_v55, %v2342_v56 }
 0x150   :  { %v2345_v25 = vpop.f32.mrf.mxu0  ;;  %2679 = vmatpush3.bf16.msra.mxu1 %v2901_v17 }
 0x151   :  { %2680 = vmatprep.subr.bf16.mxu1 %v2902_v23 }
 0x152   :  { %v2346_v42 = vpop.f32.mrf.mxu0 }
 0x153   :  { %v2347_v43 = vadd.f32 %v2346_v42, %v2345_v25 }
 0x154   :  { %v2348_v46 = vpop.f32.mrf.mxu0  ;;  %2681 = vmatpush3.bf16.msra.mxu1 %v2902_v23 }
 0x155   :  { %v614_v57 = vpack.c.bf16 %v2347_v43, %v2344_v11  ;;  %2682 = vmatprep.subr.bf16.mxu1 %v2903_v39 }
 0x156   :  { %v2349_v59 = vpop.f32.mrf.mxu0 }
 0x157   :  { %2646 = vmatprep.mubr.bf16.mxu1 %v614_v57  ;;  %v2350_v62 = vadd.f32 %v2349_v59, %v2348_v46 }
 0x158   :  { %v2351_v60 = vpop.f32.mrf.mxu0  ;;  %2683 = vmatpush3.bf16.msra.mxu1 %v2903_v39 }
 0x159   :  { %2684 = vmatprep.subr.bf16.mxu1 %v2904_v58 }
 0x15a   :  { %v2352_v61 = vpop.f32.mrf.mxu0 }
 0x15b   :  { %v2353_v63 = vadd.f32 %v2352_v61, %v2351_v60 }
 0x15c   :  { %v2354_v18 = vpop.f32.mrf.mxu0  ;;  %2685 = vmatpush3.bf16.msra.mxu1 %v2904_v58 }
 0x15d   :  { %v615_v17 = vpack.c.bf16 %v2353_v63, %v2350_v62 }
 0x15e   :  { %v2355_v19 = vpop.f32.mrf.mxu0 }
 0x15f   :  { %2647 = vmatmul.mubr.bf16.gmra.mxu1 %v615_v17  ;;  %v2356_v22 = vadd.f32 %v2355_v19, %v2354_v18 }
 0x160   :  { %v2357_v21 = vpop.f32.mrf.mxu0 }
 0x162   :  { %v2358_v56 = vpop.f32.mrf.mxu0 }
 0x163   :  { %v2359_v23 = vadd.f32 %v2358_v56, %v2357_v21 }
 0x164   :  { %v2360_v55 = vpop.f32.mrf.mxu0 }
 0x165   :  { %v616_v25 = vpack.c.bf16 %v2359_v23, %v2356_v22 }
 0x166   :  { %v2361_v42 = vpop.f32.mrf.mxu0 }
 0x167   :  { %2650 = vmatprep.mubr.bf16.mxu1 %v616_v25  ;;  %v2362_v39 = vadd.f32 %v2361_v42, %v2360_v55 }
 0x168   :  { %v2363_v11 = vpop.f32.mrf.mxu0 }
 0x16a   :  { %v2364_v43 = vpop.f32.mrf.mxu0 }
 0x16b   :  { %v2365_v57 = vadd.f32 %v2364_v43, %v2363_v11 }
 0x16c   :  { %v2366_v54 = vpop.f32.mrf.mxu0 }
 0x16d   :  { %v617_v46 = vpack.c.bf16 %v2365_v57, %v2362_v39 }
 0x16e   :  { %v2367_v59 = vpop.f32.mrf.mxu0 }
 0x16f   :  { %2651 = vmatmul.mubr.bf16.gmra.mxu1 %v617_v46  ;;  %v2368_v61 = vadd.f32 %v2367_v59, %v2366_v54 }
 0x170   :  { %v2369_v58 = vpop.f32.mrf.mxu0 }
 0x172   :  { %v2370_v60 = vpop.f32.mrf.mxu0 }
 0x173   :  { %v2371_v62 = vadd.f32 %v2370_v60, %v2369_v58 }
 0x174   :  { %v2372_v63 = vpop.f32.mrf.mxu0 }
 0x175   :  { %v618_v17 = vpack.c.bf16 %v2371_v62, %v2368_v61 }
 0x176   :  { %v2373_v18 = vpop.f32.mrf.mxu0 }
 0x177   :  { %2654 = vmatprep.mubr.bf16.mxu1 %v618_v17  ;;  %v2374_v56 = vadd.f32 %v2373_v18, %v2372_v63 }
 0x178   :  { %v2375_v19 = vpop.f32.mrf.mxu0 }
 0x17a   :  { %v2376_v21 = vpop.f32.mrf.mxu0 }
 0x17b   :  { %v2377_v22 = vadd.f32 %v2376_v21, %v2375_v19 }
 0x17c   :  { %v2378_v23 = vpop.f32.mrf.mxu0 }
 0x17d   :  { %v619_v25 = vpack.c.bf16 %v2377_v22, %v2374_v56 }
 0x17e   :  { %v2379_v55 = vpop.f32.mrf.mxu0 }
 0x17f   :  { %2655 = vmatmul.mubr.bf16.gmra.mxu1 %v619_v25  ;;  %v2380_v43 = vadd.f32 %v2379_v55, %v2378_v23 }
 0x180   :  { %v2381_v42 = vpop.f32.mrf.mxu0 }
 0x182   :  { %v2382_v11 = vpop.f32.mrf.mxu0 }
 0x183   :  { %v2383_v39 = vadd.f32 %v2382_v11, %v2381_v42 }
 0x184   :  { %v2384_v57 = vpop.f32.mrf.mxu0 }
 0x185   :  { %v620_v46 = vpack.c.bf16 %v2383_v39, %v2380_v43 }
 0x186   :  { %v2385_v54 = vpop.f32.mrf.mxu0 }
 0x187   :  { %2658 = vmatprep.mubr.bf16.mxu1 %v620_v46  ;;  %v2386_v60 = vadd.f32 %v2385_v54, %v2384_v57 }
 0x188   :  { %v2387_v59 = vpop.f32.mrf.mxu0 }
 0x18a   :  { %v2388_v58 = vpop.f32.mrf.mxu0 }
 0x18b   :  { %v2389_v61 = vadd.f32 %v2388_v58, %v2387_v59 }
 0x18c   :  { %v2390_v62 = vpop.f32.mrf.mxu0 }
 0x18d   :  { %v621_v17 = vpack.c.bf16 %v2389_v61, %v2386_v60 }
 0x18e   :  { %v2391_v63 = vpop.f32.mrf.mxu0 }
 0x18f   :  { %2659 = vmatmul.mubr.bf16.gmra.mxu1 %v621_v17  ;;  %v2392_v21 = vadd.f32 %v2391_v63, %v2390_v62 }
 0x190   :  { %v2393_v18 = vpop.f32.mrf.mxu0 }
 0x192   :  { %v2394_v19 = vpop.f32.mrf.mxu0 }
 0x193   :  { %v2395_v56 = vadd.f32 %v2394_v19, %v2393_v18 }
 0x194   :  { %v2396_v22 = vpop.f32.mrf.mxu0 }
 0x195   :  { %v622_v25 = vpack.c.bf16 %v2395_v56, %v2392_v21 }
 0x196   :  { %v2397_v23 = vpop.f32.mrf.mxu0 }
 0x197   :  { %2662 = vmatprep.mubr.bf16.mxu1 %v622_v25  ;;  %v2398_v11 = vadd.f32 %v2397_v23, %v2396_v22 }
 0x198   :  { %v2399_v55 = vpop.f32.mrf.mxu0 }
 0x19a   :  { %v2400_v42 = vpop.f32.mrf.mxu0 }
 0x19b   :  { %v2401_v43 = vadd.f32 %v2400_v42, %v2399_v55 }
 0x19c   :  { %v2402_v39 = vpop.f32.mrf.mxu0 }
 0x19d   :  { %v623_v46 = vpack.c.bf16 %v2401_v43, %v2398_v11 }
 0x19e   :  { %v2403_v57 = vpop.f32.mrf.mxu0 }
 0x19f   :  { %2663 = vmatmul.mubr.bf16.gmra.mxu1 %v623_v46  ;;  %v2404_v58 = vadd.f32 %v2403_v57, %v2402_v39 }
 0x1a0   :  { %v2405_v54 = vpop.f32.mrf.mxu0 }
 0x1a2   :  { %v2406_v59 = vpop.f32.mrf.mxu0 }
 0x1a3   :  { %v2407_v60 = vadd.f32 %v2406_v59, %v2405_v54 }
 0x1a4   :  { %v2408_v61 = vpop.f32.mrf.mxu0 }
 0x1a5   :  { %v624_v17 = vpack.c.bf16 %v2407_v60, %v2404_v58 }
 0x1a6   :  { %v2409_v62 = vpop.f32.mrf.mxu0 }
 0x1a7   :  { %2666 = vmatprep.mubr.bf16.mxu1 %v624_v17  ;;  %v2410_v19 = vadd.f32 %v2409_v62, %v2408_v61 }
 0x1a8   :  { %v2411_v63 = vpop.f32.mrf.mxu0 }
 0x1aa   :  { %v2412_v18 = vpop.f32.mrf.mxu0 }
 0x1ab   :  { %v2413_v21 = vadd.f32 %v2412_v18, %v2411_v63  ;;  %v3497_v18 = vld [vmem:[%s4104_s4] ss:$0 sm:$0xff] }
 0x1ad   :  { %v625_v56 = vpack.c.bf16 %v2413_v21, %v2410_v19 }
 0x1af   :  { %2667 = vmatmul.mubr.bf16.gmra.mxu1 %v625_v56 }
 0x1b0   :  { %2686 = vmatprep.mubr.bf16.mxu1 %v3341_v16 }
 0x1b7   :  { %2687 = vmatmul.mubr.bf16.vlgmr.msra.gmra.mxu1 %v3335_v14 }
 0x1b8   :  { %2690 = vmatprep.mubr.bf16.mxu1 %v3328_v12 }
 0x1bf   :  { %2691 = vmatmul.mubr.bf16.gmra.mxu1 %v3320_v9 }
 0x1c0   :  { %2694 = vmatprep.mubr.bf16.mxu1 %v3314_v7 }
 0x1c7   :  { %2695 = vmatmul.mubr.bf16.gmra.mxu1 %v3308_v5 }
 0x1c8   :  { %2698 = vmatprep.mubr.bf16.mxu1 %v3302_v3 }
 0x1cf   :  { %2699 = vmatmul.mubr.bf16.gmra.mxu1 %v3296_v1 }
 0x1d0   :  { %2702 = vmatprep.mubr.bf16.mxu1 %v3338_v15 }
 0x1d7   :  { %2703 = vmatmul.mubr.bf16.gmra.mxu1 %v3332_v13 }
 0x1d8   :  { %2706 = vmatprep.mubr.bf16.mxu1 %v3323_v10 }
 0x1df   :  { %2707 = vmatmul.mubr.bf16.gmra.mxu1 %v3317_v8 }
 0x1e0   :  { %2710 = vmatprep.mubr.bf16.mxu1 %v3311_v6 }
 0x1e7   :  { %2711 = vmatmul.mubr.bf16.gmra.mxu1 %v3305_v4 }
 0x1e8   :  { %2714 = vmatprep.mubr.bf16.mxu1 %v3299_v2 }
 0x1ef   :  { %2715 = vmatmul.mubr.bf16.gmra.mxu1 %v3294_v0 }
 0x1ff   :  { %v2640_v5 = vpop.f32.mrf.mxu1 }
 0x201   :  { %v724_v3 = vpop.f32.mrf.mxu1 }
 0x203   :  { %v2641_v7 = vpop.f32.mrf.mxu1 }
 0x205   :  { %v727_v1 = vpop.f32.mrf.mxu1 }
 0x20f   :  { %v2644_v9 = vpop.f32.mrf.mxu1 }
 0x211   :  { %v740_v12 = vpop.f32.mrf.mxu1 }
 0x213   :  { %v2645_v14 = vpop.f32.mrf.mxu1 }
 0x215   :  { %v743_v13 = vpop.f32.mrf.mxu1 }
 0x21f   :  { %v3446_v15 = vpop.f32.mrf.mxu1 }
 0x221   :  { %v3448_v10 = vpop.f32.mrf.mxu1 }
 0x223   :  { %v3450_v8 = vpop.f32.mrf.mxu1 }
 0x225   :  { %v3452_v6 = vpop.f32.mrf.mxu1 }
 0x22f   :  { %v3454_v4 = vpop.f32.mrf.mxu1 }
 0x231   :  { %v3456_v2 = vpop.f32.mrf.mxu1 }
 0x233   :  { %v3458_v0 = vpop.f32.mrf.mxu1 }
 0x235   :  { %v3460_v16 = vpop.f32.mrf.mxu1 }
 0x23f   :  { %v3462_v22 = vpop.f32.mrf.mxu1 }
 0x241   :  { %v3464_v25 = vpop.f32.mrf.mxu1 }
 0x243   :  { %v3466_v23 = vpop.f32.mrf.mxu1 }
 0x245   :  { %v3468_v55 = vpop.f32.mrf.mxu1 }
 0x24f   :  { %v3470_v42 = vpop.f32.mrf.mxu1 }
 0x251   :  { %v3472_v11 = vpop.f32.mrf.mxu1 }
 0x253   :  { %v3474_v43 = vpop.f32.mrf.mxu1 }
 0x255   :  { %v3476_v39 = vpop.f32.mrf.mxu1 }
 0x25f   :  { %v3478_v46 = vpop.f32.mrf.mxu1 }
 0x261   :  { %v3480_v57 = vpop.f32.mrf.mxu1 }
 0x263   :  { %v3482_v54 = vpop.f32.mrf.mxu1 }
 0x265   :  { %v3484_v59 = vpop.f32.mrf.mxu1 }
 0x26f   :  { %v3486_v58 = vpop.f32.mrf.mxu1 }
 0x271   :  { %v3488_v60 = vpop.f32.mrf.mxu1 }
 0x273   :  { %v3490_v61 = vpop.f32.mrf.mxu1 }
 0x275   :  { %v3492_v17 = vpop.f32.mrf.mxu1 }
 0x277   :  { %v2688_v62 = vpop.f32.mrf.mxu1 }
 0x278   :  { %v942_v63 = vadd.f32 %v2688_v62, %v2640_v5 }
 0x279   :  { %v933_v19 = vpop.f32.mrf.mxu1 }
 0x27a   :  { %v934_v21 = vadd.f32 %v933_v19, %v724_v3  ;;  %v1069_v53 = vadd.f32 %v3497_v18, %v942_v63 }
 0x27b   :  { %v2689_v56 = vpop.f32.mrf.mxu1 }
 0x27c   :  { %v945_v52 = vadd.f32 %v2689_v56, %v2641_v7  ;;  %v1067_v50 = vadd.f32 %v3497_v18, %v934_v21  ;;  %v1101_v45 = vmax.f32 %v1069_v53, 0.0 }
 0x27d   :  { %v936_v51 = vpop.f32.mrf.mxu1 }
 0x27e   :  { %v1070_v49 = vadd.f32 %v3497_v18, %v945_v52  ;;  %v937_v48 = vadd.f32 %v936_v51, %v727_v1  ;;  %v1099_v40 = vmax.f32 %v1067_v50, 0.0 }
 0x27f   :  { %v2692_v47 = vpop.f32.mrf.mxu1 }
 0x280   :  { %v1102_v5 = vmax.f32 %v1070_v49, 0.0  ;;  %v1068_v62 = vadd.f32 %v3497_v18, %v937_v48  ;;  %v958_v44 = vadd.f32 %v2692_v47, %v2644_v9 }
 0x281   :  { %v949_v41 = vpop.f32.mrf.mxu1 }
 0x282   :  { %v3503_v38 = vpack.c.bf16 %v1102_v5, %v1101_v45  ;;  %v1100_v3 = vmax.f32 %v1068_v62, 0.0  ;;  %v950_v19 = vadd.f32 %v949_v41, %v740_v12  ;;  %v1073_v21 = vadd.f32 %v3497_v18, %v958_v44 }
 0x283   :  { %v2693_v63 = vpop.f32.mrf.mxu1 }
 0x284   :  { %v3505_v7 = vpack.c.bf16 %v1100_v3, %v1099_v40  ;;  %v961_v56 = vadd.f32 %v2693_v63, %v2645_v14  ;;  %v1071_v51 = vadd.f32 %v3497_v18, %v950_v19  ;;  %v1105_v47 = vmax.f32 %v1073_v21, 0.0 }
 0x285   :  { %v952_v52 = vpop.f32.mrf.mxu1 }
 0x286   :  { %v1074_v49 = vadd.f32 %v3497_v18, %v961_v56  ;;  %v953_v53 = vadd.f32 %v952_v52, %v743_v13  ;;  %v1103_v41 = vmax.f32 %v1071_v51, 0.0 }
 0x287   :  { %v2696_v48 = vpop.f32.mrf.mxu1 }
 0x288   :  { %v1106_v1 = vmax.f32 %v1074_v49, 0.0  ;;  %v1072_v45 = vadd.f32 %v3497_v18, %v953_v53 }
 0x289   :  { %v3511_v50 = vpop.f32.mrf.mxu1 }
 0x28a   :  { %v3513_v9 = vpack.c.bf16 %v1106_v1, %v1105_v47  ;;  %v1104_v40 = vmax.f32 %v1072_v45, 0.0 }
 0x28b   :  { %v2697_v12 = vpop.f32.mrf.mxu1 }
 0x28c   :  { %v3515_v44 = vpack.c.bf16 %v1104_v40, %v1103_v41 }
 0x28d   :  { %v968_v14 = vpop.f32.mrf.mxu1 }
 0x28f   :  { %v2700_v5 = vpop.f32.mrf.mxu1 }
 0x290   :  { %v990_v35 = vadd.f32 %v2700_v5, %v3454_v4 }
 0x291   :  { %v981_v62 = vpop.f32.mrf.mxu1 }
 0x293   :  { %v2701_v3 = vpop.f32.mrf.mxu1 }
 0x294   :  { %v993_v40 = vadd.f32 %v2701_v3, %v3458_v0  ;;  %v1081_v0 = vadd.f32 %v3497_v18, %v990_v35 }
 0x295   :  { %v984_v19 = vpop.f32.mrf.mxu1 }
 0x296   :  { %v1082_v32 = vadd.f32 %v3497_v18, %v993_v40  ;;  %v985_v31 = vadd.f32 %v984_v19, %v3460_v16 }
 0x297   :  { %v3517_v13 = vpop.f32.mrf.mxu1 }
 0x298   :  { %v1114_v5 = vmax.f32 %v1082_v32, 0.0 }
 0x299   :  { %v3519_v63 = vpop.f32.mrf.mxu1 }
 0x29b   :  { %v3521_v21 = vpop.f32.mrf.mxu1 }
 0x29d   :  { %v3523_v56 = vpop.f32.mrf.mxu1 }
 0x29f   :  { %v2708_v52 = vpop.f32.mrf.mxu1 }
 0x2a1   :  { %v3525_v51 = vpop.f32.mrf.mxu1 }
 0x2a3   :  { %v2709_v49 = vpop.f32.mrf.mxu1 }
 0x2a5   :  { %v1016_v53 = vpop.f32.mrf.mxu1 }
 0x2a7   :  { %v2712_v47 = vpop.f32.mrf.mxu1 }
 0x2a8   :  { %v1038_v4 = vadd.f32 %v2712_v47, %v3478_v46 }
 0x2a9   :  { %v1029_v1 = vpop.f32.mrf.mxu1 }
 0x2ab   :  { %v2713_v45 = vpop.f32.mrf.mxu1 }
 0x2ac   :  { %v1041_v30 = vadd.f32 %v2713_v45, %v3482_v54  ;;  %v977_v54 = vadd.f32 %v2697_v12, %v3450_v8  ;;  %v1030_v8 = vadd.f32 %v1029_v1, %v3480_v57  ;;  %v966_v1 = vadd.f32 %v3511_v50, %v3448_v10 }
 0x2ad   :  { %v1032_v41 = vpop.f32.mrf.mxu1 }
 0x2ae   :  { %v1033_v35 = vadd.f32 %v1032_v41, %v3484_v59 }
 0x2af   :  { %v2716_v37 = vpop.f32.mrf.mxu1 }
 0x2b0   :  { %v1054_v36 = vadd.f32 %v2716_v37, %v3486_v58  ;;  %v982_v37 = vadd.f32 %v981_v62, %v3456_v2  ;;  %v974_v62 = vadd.f32 %v2696_v48, %v3446_v15  ;;  %v1025_v15 = vadd.f32 %v2709_v49, %v3474_v43 }
 0x2b1   :  { %v1045_v34 = vpop.f32.mrf.mxu1  ;;  %v1092_v19 = vadd.f32 %v3497_v18, %v1033_v35  ;;  %v1091_v43 = vadd.f32 %v3497_v18, %v1030_v8 }
 0x2b2   :  { %v1046_v33 = vadd.f32 %v1045_v34, %v3488_v60  ;;  %v1097_v28 = vadd.f32 %v3497_v18, %v1054_v36  ;;  %v1080_v36 = vadd.f32 %v3497_v18, %v985_v31  ;;  %v1077_v57 = vadd.f32 %v3497_v18, %v974_v62 }
 0x2b3   :  { %v2717_v29 = vpop.f32.mrf.mxu1  ;;  %v1124_v10 = vmax.f32 %v1092_v19, 0.0  ;;  %v4164_v19 = vld [vmem:[#allocation24_spill] sm:$0xff] }
 0x2b4   :  { %v1057_v27 = vadd.f32 %v2717_v29, %v3490_v61  ;;  %v1095_v34 = vadd.f32 %v3497_v18, %v1046_v33  ;;  %v1094_v29 = vadd.f32 %v3497_v18, %v1041_v30  ;;  %v1129_v61 = vmax.f32 %v1097_v28, 0.0 }
 0x2b5   :  { %v1048_v58 = vpop.f32.mrf.mxu1  ;;  %v1113_v33 = vmax.f32 %v1081_v0, 0.0  ;;  %v1078_v30 = vadd.f32 %v3497_v18, %v977_v54  ;;  %v969_v28 = vadd.f32 %v968_v14, %v3452_v6  ;;  %v1112_v3 = vmax.f32 %v1080_v36, 0.0 }
 0x2b6   :  { %v1098_v60 = vadd.f32 %v3497_v18, %v1057_v27  ;;  %v1049_v16 = vadd.f32 %v1048_v58, %v3492_v17  ;;  %v1079_v27 = vadd.f32 %v3497_v18, %v982_v37  ;;  %v1093_v17 = vadd.f32 %v3497_v18, %v1038_v4 }
 0x2b7   :  { %v1127_v32 = vmax.f32 %v1095_v34, 0.0  ;;  %v3555_v59 = vpack.c.bf16 %v1114_v5, %v1113_v33  ;;  %v1126_v48 = vmax.f32 %v1094_v29, 0.0  ;;  %v1022_v6 = vadd.f32 %v2708_v52, %v3470_v42 }
 0x2b8   :  { %v1130_v2 = vmax.f32 %v1098_v60, 0.0  ;;  %v1096_v46 = vadd.f32 %v3497_v18, %v1049_v16  ;;  %v1111_v45 = vmax.f32 %v1079_v27, 0.0  ;;  %v1125_v14 = vmax.f32 %v1093_v17, 0.0 }
 0x2b9   :  { %v1110_v49 = vmax.f32 %v1078_v30, 0.0  ;;  %v1076_v41 = vadd.f32 %v3497_v18, %v969_v28  ;;  %v1090_v0 = vadd.f32 %v3497_v18, %v1025_v15  ;;  %v1017_v37 = vadd.f32 %v1016_v53, %v3476_v39  ;;  %v4159_v30 = vld [vmem:[#allocation19_spill] sm:$0xff]  ;;  %v4160_v28 = vld [vmem:[#allocation20_spill] sm:$0xff]  ;;  %v4162_v15 = vld [vmem:[#allocation22_spill] sm:$0xff] }
 0x2ba   :  { %v1128_v12 = vmax.f32 %v1096_v46, 0.0  ;;  %v3551_v31 = vpack.c.bf16 %v1130_v2, %v1129_v61  ;;  %v3570_v40 = vpack.c.bf16 %v1112_v3, %v1111_v45  ;;  %v3574_v50 = vpack.c.bf16 %v1126_v48, %v1125_v14  ;;  %v4161_v3 = vld [vmem:[#allocation21_spill] sm:$0xff]  ;;  %v4163_v48 = vld [vmem:[#allocation23_spill] sm:$0xff]  ;;  %v4168_v45 = vld [vmem:[#allocation28_spill] sm:$0xff] }
 0x2bb   :  { %v1109_v4 = vmax.f32 %v1077_v57, 0.0  ;;  %v1075_v42 = vadd.f32 %v3497_v18, %v966_v1  ;;  %v1089_v52 = vadd.f32 %v3497_v18, %v1022_v6  ;;  %v1014_v58 = vadd.f32 %v3525_v51, %v3472_v11  ;;  %v4165_v57 = vld [vmem:[#allocation25_spill] sm:$0xff]  ;;  %v4166_v1 = vld [vmem:[#allocation26_spill] sm:$0xff]  ;;  %v2907_v6 = vld [vmem:[#allocation11 + $0x28] sm:$0xff]  }
 0x2bc   :  { %2462 = vmatprep.subr.bf16.mxu0 %v3551_v31  ;;  %v3560_v47 = vpack.c.bf16 %v1128_v12, %v1127_v32  ;;  %v1123_v34 = vmax.f32 %v1091_v43, 0.0  ;;  %v1108_v16 = vmax.f32 %v1076_v41, 0.0  ;;  %v1009_v39 = vadd.f32 %v3521_v21, %v3466_v23  ;;  %v3049_v32 = vld [vmem:[#allocation2] ss:$8 sps:$4 sm:$0xff]   ;;  %v3051_v12 = vld [vmem:[#allocation2 + $0x10] ss:$8 sps:$4 sm:$0xff]  }
 0x2bd   :  { %2463 = vmatpush3.bf16.msra.mxu0 %v3555_v59  ;;  %v3582_v60 = vpack.c.bf16 %v1110_v49, %v1109_v4  ;;  %v1122_v53 = vmax.f32 %v1090_v0, 0.0  ;;  %v1088_v54 = vadd.f32 %v3497_v18, %v1017_v37  ;;  %v1107_v36 = vmax.f32 %v1075_v42, 0.0  ;;  %v2908_v14 = vld [vmem:[#allocation11 + $0x20] sm:$0xff]   ;;  %v4169_v43 = vld [vmem:[#allocation29_spill] sm:$0xff]  ;;  %v4170_v49 = vld [vmem:[#allocation30_spill] sm:$0xff] }
 0x2be   :  { %2464 = vmatprep.subr.bf16.mxu0 %v3560_v47  ;;  %v3587_v5 = vpack.c.bf16 %v1124_v10, %v1123_v34  ;;  %v1006_v11 = vadd.f32 %v3517_v13, %v3462_v22  ;;  %v1121_v51 = vmax.f32 %v1089_v52, 0.0  ;;  %v1087_v29 = vadd.f32 %v3497_v18, %v1014_v58  ;;  %v2909_v41 = vld [vmem:[#allocation11 + $0x18] sm:$0xff]   ;;  %v2910_v0 = vld [vmem:[#allocation11 + $0x10] sm:$0xff]   ;;  %v4171_v37 = vld [vmem:[#allocation31_spill] sm:$0xff] }
 0x2bf   :  { %v3594_v35 = vpack.c.bf16 %v1108_v16, %v1107_v36  ;;  %v1086_v23 = vadd.f32 %v3497_v18, %v1009_v39  ;;  %v1001_v21 = vadd.f32 %v3523_v56, %v3468_v55  ;;  %v1120_v61 = vmax.f32 %v1088_v54, 0.0  ;;  %v4172_v10 = vld [vmem:[#allocation32_spill] sm:$0xff]  ;;  %v2912_v42 = vld [vmem:[#allocation11] sm:$0xff]   ;;  %v4173_v52 = vld [vmem:[#allocation33_spill] sm:$0xff] }
 0x2c0   :  { %v3599_v2 = vpack.c.bf16 %v1122_v53, %v1121_v51  ;;  %v1085_v46 = vadd.f32 %v3497_v18, %v1006_v11  ;;  %v998_v22 = vadd.f32 %v3519_v63, %v3464_v25  ;;  %v1119_v13 = vmax.f32 %v1087_v29, 0.0  ;;  %v2911_v4 = vld [vmem:[#allocation11 + $0x8] sm:$0xff]   ;;  %v4174_v58 = vld [vmem:[#allocation34_spill] sm:$0xff]  ;;  %v4175_v34 = vld [vmem:[#allocation35_spill] sm:$0xff] }
 0x2c1   :  { %2465 = vmatpush3.bf16.msra.mxu0 %v3570_v40  ;;  %v1118_v62 = vmax.f32 %v1086_v23, 0.0  ;;  %v1084_v33 = vadd.f32 %v3497_v18, %v1001_v21  ;;  %v4176_v16 = vld [vmem:[#allocation36_spill] sm:$0xff]  ;;  %v4177_v39 = vld [vmem:[#allocation37_spill] sm:$0xff]  ;;  %v4178_v53 = vld [vmem:[#allocation38_spill] sm:$0xff] }
 0x2c2   :  { %2466 = vmatprep.subr.bf16.mxu0 %v3574_v50  ;;  %v3607_v27 = vpack.c.bf16 %v1120_v61, %v1119_v13  ;;  %v1117_v55 = vmax.f32 %v1085_v46, 0.0  ;;  %v1083_v56 = vadd.f32 %v3497_v18, %v998_v22  ;;  %v3050_v18 = vld [vmem:[#allocation2 + $0x14] ss:$8 sps:$4 sm:$0xff]   ;;  %v4179_v54 = vld [vmem:[#allocation39_spill] sm:$0xff]  ;;  %v4180_v36 = vld [vmem:[#allocation40_spill] sm:$0xff] }
 0x2c3   :  { %v1116_v17 = vmax.f32 %v1084_v33, 0.0  ;;  %v4181_v11 = vld [vmem:[#allocation41_spill] sm:$0xff]  ;;  %v4182_v51 = vld [vmem:[#allocation42_spill] sm:$0xff]  ;;  %v4183_v29 = vld [vmem:[#allocation43_spill] sm:$0xff] }
 0x2c4   :  { %v3612_v8 = vpack.c.bf16 %v1118_v62, %v1117_v55  ;;  %v1115_v25 = vmax.f32 %v1083_v56, 0.0  ;;  %v2913_v23 = vld [vmem:[#allocation10 + $0x38] sm:$0xff]  }
 0x2c5   :  { %2467 = vmatpush3.bf16.msra.mxu0 %v3582_v60 }
 0x2c6   :  { %2468 = vmatprep.subr.bf16.mxu0 %v3587_v5  ;;  %v3616_v63 = vpack.c.bf16 %v1116_v17, %v1115_v25 }
 0x2c9   :  { %2469 = vmatpush3.bf16.msra.mxu0 %v3594_v35 }
 0x2ca   :  { %2470 = vmatprep.subr.bf16.mxu0 %v3599_v2 }
 0x2cd   :  { %2471 = vmatpush3.bf16.msra.mxu0 %v3513_v9 }
 0x2ce   :  { %2472 = vmatprep.subr.bf16.mxu0 %v3607_v27 }
 0x2d1   :  { %2473 = vmatpush3.bf16.msra.mxu0 %v3515_v44 }
 0x2d2   :  { %2474 = vmatprep.subr.bf16.mxu0 %v3612_v8 }
 0x2d5   :  { %2475 = vmatpush3.bf16.msra.mxu0 %v3503_v38 }
 0x2d6   :  { %2476 = vmatprep.subr.bf16.mxu0 %v3616_v63 }
 0x2d9   :  { %2477 = vmatpush3.bf16.msra.mxu0 %v3505_v7 }
 0x2dc   :  { %1180 = vmatmul.mubr.bf16.vlgmr.msra.gmra.mxu0 %v3049_v32 }
 0x2dd   :  { %1187 = vmatprep.mubr.bf16.mxu0 %v3050_v18 }
 0x2e4   :  { %1188 = vmatmul.mubr.bf16.gmra.mxu0 %v3051_v12 }
 0x2e5   :  { %1195 = vmatprep.mubr.bf16.mxu0 %v3345_v20  ;;  %v2905_v20 = vld [vmem:[#allocation11 + $0x38] sm:$0xff]  }
 0x2e6   :  { %2718 = vmatprep.subr.bf16.mxu1 %v2905_v20 }
 0x2e7   :  { %2719 = vmatpush3.bf16.msra.mxu1 %v2905_v20 }
 0x2ec   :  { %1196 = vmatmul.mubr.bf16.gmra.mxu0 %v3348_v24  ;;  %v2906_v24 = vld [vmem:[#allocation11 + $0x30] sm:$0xff]  }
 0x2ed   :  { %1203 = vmatprep.mubr.bf16.mxu0 %v3350_v26  ;;  %2720 = vmatprep.subr.bf16.mxu1 %v2906_v24  ;;  %v4167_v26 = vld [vmem:[#allocation27_spill] sm:$0xff] }
 0x2ee   :  { %2721 = vmatpush3.bf16.msra.mxu1 %v2906_v24 }
 0x2ef   :  { %2722 = vmatprep.subr.bf16.mxu1 %v2907_v6 }
 0x2f2   :  { %2723 = vmatpush3.bf16.msra.mxu1 %v2907_v6 }
 0x2f3   :  { %2724 = vmatprep.subr.bf16.mxu1 %v2908_v14 }
 0x2f4   :  { %1204 = vmatmul.mubr.bf16.gmra.mxu0 %v4159_v30 }
 0x2f5   :  { %1211 = vmatprep.mubr.bf16.mxu0 %v4160_v28  ;;  %v2914_v28 = vld [vmem:[#allocation10 + $0x30] sm:$0xff]  }
 0x2f6   :  { %2725 = vmatpush3.bf16.msra.mxu1 %v2908_v14  ;;  %v2917_v14 = vld [vmem:[#allocation10 + $0x18] sm:$0xff]  }
 0x2f7   :  { %2726 = vmatprep.subr.bf16.mxu1 %v2909_v41 }
 0x2fa   :  { %2727 = vmatpush3.bf16.msra.mxu1 %v2909_v41 }
 0x2fb   :  { %2728 = vmatprep.subr.bf16.mxu1 %v2910_v0 }
 0x2fc   :  { %1212 = vmatmul.mubr.bf16.gmra.mxu0 %v4161_v3 }
 0x2fd   :  { %1219 = vmatprep.mubr.bf16.mxu0 %v4162_v15 }
 0x2fe   :  { %2729 = vmatpush3.bf16.msra.mxu1 %v2910_v0 }
 0x2ff   :  { %2730 = vmatprep.subr.bf16.mxu1 %v2911_v4 }
 0x302   :  { %2731 = vmatpush3.bf16.msra.mxu1 %v2911_v4 }
 0x303   :  { %2732 = vmatprep.subr.bf16.mxu1 %v2912_v42 }
 0x304   :  { %1220 = vmatmul.mubr.bf16.gmra.mxu0 %v4163_v48  ;;  %v2915_v48 = vld [vmem:[#allocation10 + $0x28] sm:$0xff]  }
 0x305   :  { %1227 = vmatprep.mubr.bf16.mxu0 %v4164_v19 }
 0x306   :  { %2733 = vmatpush3.bf16.msra.mxu1 %v2912_v42 }
 0x307   :  { %2766 = vmatprep.subr.bf16.mxu1 %v2913_v23 }
 0x30c   :  { %1228 = vmatmul.mubr.bf16.gmra.mxu0 %v4165_v57 }
 0x30d   :  { %1235 = vmatprep.mubr.bf16.mxu0 %v4166_v1 }
 0x314   :  { %1236 = vmatmul.mubr.bf16.gmra.mxu0 %v4167_v26  ;;  %v2916_v26 = vld [vmem:[#allocation10 + $0x20] sm:$0xff]  }
 0x315   :  { %1243 = vmatprep.mubr.bf16.mxu0 %v4168_v45 }
 0x31c   :  { %1244 = vmatmul.mubr.bf16.gmra.mxu0 %v4169_v43 }
 0x31d   :  { %1251 = vmatprep.mubr.bf16.mxu0 %v4170_v49 }
 0x324   :  { %1252 = vmatmul.mubr.bf16.gmra.mxu0 %v4171_v37 }
 0x325   :  { %1259 = vmatprep.mubr.bf16.mxu0 %v4172_v10  ;;  %v2918_v10 = vld [vmem:[#allocation10 + $0x10] sm:$0xff]  }
 0x32c   :  { %1260 = vmatmul.mubr.bf16.gmra.mxu0 %v4173_v52  ;;  %v2919_v52 = vld [vmem:[#allocation10 + $0x8] sm:$0xff]  }
 0x32d   :  { %1267 = vmatprep.mubr.bf16.mxu0 %v4174_v58 }
 0x334   :  { %1268 = vmatmul.mubr.bf16.gmra.mxu0 %v4175_v34 }
 0x335   :  { %1275 = vmatprep.mubr.bf16.mxu0 %v4176_v16 }
 0x33c   :  { %1276 = vmatmul.mubr.bf16.gmra.mxu0 %v4177_v39 }
 0x33d   :  { %1283 = vmatprep.mubr.bf16.mxu0 %v4178_v53 }
 0x344   :  { %1284 = vmatmul.mubr.bf16.gmra.mxu0 %v4179_v54  ;;  %v2920_v54 = vld [vmem:[#allocation10] sm:$0xff]  }
 0x345   :  { %1291 = vmatprep.mubr.bf16.mxu0 %v4180_v36 }
 0x34c   :  { %1292 = vmatmul.mubr.bf16.gmra.mxu0 %v4181_v11 }
 0x34d   :  { %1299 = vmatprep.mubr.bf16.mxu0 %v4182_v51 }
 0x354   :  { %1300 = vmatmul.mubr.bf16.gmra.mxu0 %v4183_v29 }
 0x39c   :  { %v2478_v21 = vpop.f32.mrf.mxu0 }
 0x39e   :  { %v2479_v61 = vpop.f32.mrf.mxu0 }
 0x39f   :  { %v2480_v13 = vadd.f32 %v2479_v61, %v2478_v21 }
 0x3a0   :  { %v2481_v46 = vpop.f32.mrf.mxu0 }
 0x3a2   :  { %v2482_v22 = vpop.f32.mrf.mxu0 }
 0x3a3   :  { %v2483_v62 = vadd.f32 %v2482_v22, %v2481_v46 }
 0x3a4   :  { %v2484_v33 = vpop.f32.mrf.mxu0 }
 0x3a5   :  { %v1324_v55 = vpack.c.bf16 %v2483_v62, %v2480_v13 }
 0x3a6   :  { %v2485_v56 = vpop.f32.mrf.mxu0 }
 0x3a7   :  { %2734 = vmatprep.mubr.bf16.mxu1 %v1324_v55  ;;  %v2486_v32 = vadd.f32 %v2485_v56, %v2484_v33 }
 0x3a8   :  { %v2487_v17 = vpop.f32.mrf.mxu0 }
 0x3aa   :  { %v2488_v25 = vpop.f32.mrf.mxu0 }
 0x3ab   :  { %v2489_v18 = vadd.f32 %v2488_v25, %v2487_v17 }
 0x3ac   :  { %v2490_v12 = vpop.f32.mrf.mxu0 }
 0x3ad   :  { %v1325_v30 = vpack.c.bf16 %v2489_v18, %v2486_v32 }
 0x3ae   :  { %v2491_v3 = vpop.f32.mrf.mxu0 }
 0x3af   :  { %2735 = vmatmul.mubr.bf16.vlgmr.msra.gmra.mxu1 %v1325_v30  ;;  %v2492_v57 = vadd.f32 %v2491_v3, %v2490_v12 }
 0x3b0   :  { %v2493_v15 = vpop.f32.mrf.mxu0  ;;  %2767 = vmatpush3.bf16.msra.mxu1 %v2913_v23 }
 0x3b1   :  { %2768 = vmatprep.subr.bf16.mxu1 %v2914_v28 }
 0x3b2   :  { %v2494_v19 = vpop.f32.mrf.mxu0 }
 0x3b3   :  { %v2495_v1 = vadd.f32 %v2494_v19, %v2493_v15 }
 0x3b4   :  { %v2496_v20 = vpop.f32.mrf.mxu0  ;;  %2769 = vmatpush3.bf16.msra.mxu1 %v2914_v28 }
 0x3b5   :  { %v1326_v24 = vpack.c.bf16 %v2495_v1, %v2492_v57  ;;  %2770 = vmatprep.subr.bf16.mxu1 %v2915_v48 }
 0x3b6   :  { %v2497_v45 = vpop.f32.mrf.mxu0 }
 0x3b7   :  { %2738 = vmatprep.mubr.bf16.mxu1 %v1326_v24  ;;  %v2498_v49 = vadd.f32 %v2497_v45, %v2496_v20 }
 0x3b8   :  { %v2499_v6 = vpop.f32.mrf.mxu0  ;;  %2771 = vmatpush3.bf16.msra.mxu1 %v2915_v48 }
 0x3b9   :  { %2772 = vmatprep.subr.bf16.mxu1 %v2916_v26 }
 0x3ba   :  { %v2500_v43 = vpop.f32.mrf.mxu0 }
 0x3bb   :  { %v2501_v41 = vadd.f32 %v2500_v43, %v2499_v6 }
 0x3bc   :  { %v2502_v0 = vpop.f32.mrf.mxu0  ;;  %2773 = vmatpush3.bf16.msra.mxu1 %v2916_v26 }
 0x3bd   :  { %v1327_v37 = vpack.c.bf16 %v2501_v41, %v2498_v49  ;;  %2774 = vmatprep.subr.bf16.mxu1 %v2917_v14 }
 0x3be   :  { %v2503_v4 = vpop.f32.mrf.mxu0 }
 0x3bf   :  { %2739 = vmatmul.mubr.bf16.gmra.mxu1 %v1327_v37  ;;  %v2504_v34 = vadd.f32 %v2503_v4, %v2502_v0 }
 0x3c0   :  { %v2505_v42 = vpop.f32.mrf.mxu0  ;;  %2775 = vmatpush3.bf16.msra.mxu1 %v2917_v14 }
 0x3c1   :  { %2776 = vmatprep.subr.bf16.mxu1 %v2918_v10 }
 0x3c2   :  { %v2506_v58 = vpop.f32.mrf.mxu0 }
 0x3c3   :  { %v2507_v16 = vadd.f32 %v2506_v58, %v2505_v42 }
 0x3c4   :  { %v2508_v39 = vpop.f32.mrf.mxu0  ;;  %2777 = vmatpush3.bf16.msra.mxu1 %v2918_v10 }
 0x3c5   :  { %v1328_v53 = vpack.c.bf16 %v2507_v16, %v2504_v34  ;;  %2778 = vmatprep.subr.bf16.mxu1 %v2919_v52 }
 0x3c6   :  { %v2509_v36 = vpop.f32.mrf.mxu0 }
 0x3c7   :  { %2742 = vmatprep.mubr.bf16.mxu1 %v1328_v53  ;;  %v2510_v29 = vadd.f32 %v2509_v36, %v2508_v39 }
 0x3c8   :  { %v2511_v11 = vpop.f32.mrf.mxu0  ;;  %2779 = vmatpush3.bf16.msra.mxu1 %v2919_v52 }
 0x3c9   :  { %2780 = vmatprep.subr.bf16.mxu1 %v2920_v54 }
 0x3ca   :  { %v2512_v51 = vpop.f32.mrf.mxu0 }
 0x3cb   :  { %v2513_v23 = vadd.f32 %v2512_v51, %v2511_v11 }
 0x3cc   :  { %v2514_v21 = vpop.f32.mrf.mxu0  ;;  %2781 = vmatpush3.bf16.msra.mxu1 %v2920_v54 }
 0x3cd   :  { %v1329_v61 = vpack.c.bf16 %v2513_v23, %v2510_v29 }
 0x3ce   :  { %v2515_v46 = vpop.f32.mrf.mxu0 }
 0x3cf   :  { %2743 = vmatmul.mubr.bf16.gmra.mxu1 %v1329_v61  ;;  %v2516_v62 = vadd.f32 %v2515_v46, %v2514_v21 }
 0x3d0   :  { %v2517_v22 = vpop.f32.mrf.mxu0 }
 0x3d2   :  { %v2518_v13 = vpop.f32.mrf.mxu0 }
 0x3d3   :  { %v2519_v33 = vadd.f32 %v2518_v13, %v2517_v22 }
 0x3d4   :  { %v2520_v55 = vpop.f32.mrf.mxu0 }
 0x3d5   :  { %v1330_v56 = vpack.c.bf16 %v2519_v33, %v2516_v62 }
 0x3d6   :  { %v2521_v17 = vpop.f32.mrf.mxu0 }
 0x3d7   :  { %2746 = vmatprep.mubr.bf16.mxu1 %v1330_v56  ;;  %v2522_v18 = vadd.f32 %v2521_v17, %v2520_v55 }
 0x3d8   :  { %v2523_v25 = vpop.f32.mrf.mxu0 }
 0x3da   :  { %v2524_v32 = vpop.f32.mrf.mxu0 }
 0x3db   :  { %v2525_v12 = vadd.f32 %v2524_v32, %v2523_v25 }
 0x3dc   :  { %v2526_v30 = vpop.f32.mrf.mxu0 }
 0x3dd   :  { %v1331_v28 = vpack.c.bf16 %v2525_v12, %v2522_v18 }
 0x3de   :  { %v2527_v3 = vpop.f32.mrf.mxu0 }
 0x3df   :  { %2747 = vmatmul.mubr.bf16.gmra.mxu1 %v1331_v28  ;;  %v2528_v19 = vadd.f32 %v2527_v3, %v2526_v30 }
 0x3e0   :  { %v2529_v15 = vpop.f32.mrf.mxu0 }
 0x3e2   :  { %v2530_v48 = vpop.f32.mrf.mxu0 }
 0x3e3   :  { %v2531_v57 = vadd.f32 %v2530_v48, %v2529_v15 }
 0x3e4   :  { %v2532_v1 = vpop.f32.mrf.mxu0 }
 0x3e5   :  { %v1332_v20 = vpack.c.bf16 %v2531_v57, %v2528_v19 }
 0x3e6   :  { %v2533_v24 = vpop.f32.mrf.mxu0 }
 0x3e7   :  { %2750 = vmatprep.mubr.bf16.mxu1 %v1332_v20  ;;  %v2534_v6 = vadd.f32 %v2533_v24, %v2532_v1 }
 0x3e8   :  { %v2535_v26 = vpop.f32.mrf.mxu0 }
 0x3ea   :  { %v2536_v45 = vpop.f32.mrf.mxu0 }
 0x3eb   :  { %v2537_v14 = vadd.f32 %v2536_v45, %v2535_v26 }
 0x3ec   :  { %v2538_v43 = vpop.f32.mrf.mxu0 }
 0x3ed   :  { %v1333_v49 = vpack.c.bf16 %v2537_v14, %v2534_v6 }
 0x3ee   :  { %v2539_v41 = vpop.f32.mrf.mxu0 }
 0x3ef   :  { %2751 = vmatmul.mubr.bf16.gmra.mxu1 %v1333_v49  ;;  %v2540_v10 = vadd.f32 %v2539_v41, %v2538_v43 }
 0x3f0   :  { %v2541_v0 = vpop.f32.mrf.mxu0 }
 0x3f2   :  { %v2542_v37 = vpop.f32.mrf.mxu0 }
 0x3f3   :  { %v2543_v4 = vadd.f32 %v2542_v37, %v2541_v0 }
 0x3f4   :  { %v2544_v42 = vpop.f32.mrf.mxu0 }
 0x3f5   :  { %v1334_v52 = vpack.c.bf16 %v2543_v4, %v2540_v10 }
 0x3f6   :  { %v2545_v58 = vpop.f32.mrf.mxu0 }
 0x3f7   :  { %2754 = vmatprep.mubr.bf16.mxu1 %v1334_v52  ;;  %v2546_v39 = vadd.f32 %v2545_v58, %v2544_v42  ;;  %v1813_v58 = vlaneseq }
 0x3f8   :  { %v2547_v34 = vpop.f32.mrf.mxu0 }
 0x3fa   :  { %v2548_v16 = vpop.f32.mrf.mxu0 }
 0x3fb   :  { %v2549_v53 = vadd.f32 %v2548_v16, %v2547_v34 }
 0x3fc   :  { %v2550_v54 = vpop.f32.mrf.mxu0 }
 0x3fd   :  { %v1335_v36 = vpack.c.bf16 %v2549_v53, %v2546_v39  ;;  %v3711_v39 = vand.u32 127, %v1813_v58 }
 0x3fe   :  { %v2551_v11 = vpop.f32.mrf.mxu0 }
 0x3ff   :  { %2755 = vmatmul.mubr.bf16.gmra.mxu1 %v1335_v36  ;;  %v2552_v23 = vadd.f32 %v2551_v11, %v2550_v54  ;;  %v3716_v54 = vld [vmem:[%s4107_s7] ss:$0 sm:$0xff]  ;;  %vm1815_vm0 = vcmp.lt.s32.totalorder %v3711_v39, 8  ;;  %s3212_s7 = smov [#allocation13]  }
 0x400   :  { %v2553_v51 = vpop.f32.mrf.mxu0  ;;  %s2205_s9 = sshll.u32 %s3212_s7, 4  ;;  %s2206_s9 = int_to_ptr.vmem [resolvable:$true] %s2205_s9 }
 0x401   :  { %s3172_s15 = scalar_lea.vmem %s2206_s9, 4096  ;;  %p3177_p3 = scmp.lt.s32.totalorder %s2206_s9, %s2206_s9 }
 0x402   :  { %v2554_v29 = vpop.f32.mrf.mxu0  ;;  %p3173_p2 = scmp.ne.s32.totalorder %s2206_s9, %s3172_s15  ;;  %p3178_p4 = scmp.lt.s32.totalorder %s3172_s15, %s3172_s15 }
 0x403   :  { %v2555_v21 = vadd.f32 %v2554_v29, %v2553_v51 }
 0x404   :  { %v2556_v61 = vpop.f32.mrf.mxu0  ;;  %p3179_p5 = por %p3178_p4, %p3177_p3 }
 0x405   :  { %v1336_v46 = vpack.c.bf16 %v2555_v21, %v2552_v23 }
 0x406   :  { %v2557_v22 = vpop.f32.mrf.mxu0  ;;  %p3180_p6 = pnand %p3179_p5, %p3173_p2 }
 0x407   :  { %2758 = vmatprep.mubr.bf16.mxu1 %v1336_v46  ;;  %v2558_v33 = vadd.f32 %v2557_v22, %v2556_v61 }
 0x408   :  { %v2559_v13 = vpop.f32.mrf.mxu0 }
 0x40a   :  { %v2560_v62 = vpop.f32.mrf.mxu0 }
 0x40b   :  { %v2561_v55 = vadd.f32 %v2560_v62, %v2559_v13 }
 0x40c   :  { %v2562_v56 = vpop.f32.mrf.mxu0 }
 0x40d   :  { %v1337_v17 = vpack.c.bf16 %v2561_v55, %v2558_v33 }
 0x40e   :  { %v2563_v25 = vpop.f32.mrf.mxu0 }
 0x40f   :  { %2759 = vmatmul.mubr.bf16.gmra.mxu1 %v1337_v17  ;;  %v2564_v12 = vadd.f32 %v2563_v25, %v2562_v56 }
 0x410   :  { %v2565_v32 = vpop.f32.mrf.mxu0 }
 0x412   :  { %v2566_v18 = vpop.f32.mrf.mxu0 }
 0x413   :  { %v2567_v30 = vadd.f32 %v2566_v18, %v2565_v32 }
 0x414   :  { %v2568_v28 = vpop.f32.mrf.mxu0 }
 0x415   :  { %v1338_v3 = vpack.c.bf16 %v2567_v30, %v2564_v12 }
 0x416   :  { %v2569_v15 = vpop.f32.mrf.mxu0 }
 0x417   :  { %2762 = vmatprep.mubr.bf16.mxu1 %v1338_v3  ;;  %v2570_v57 = vadd.f32 %v2569_v15, %v2568_v28 }
 0x418   :  { %v2571_v48 = vpop.f32.mrf.mxu0 }
 0x41a   :  { %v2572_v19 = vpop.f32.mrf.mxu0 }
 0x41b   :  { %v2573_v1 = vadd.f32 %v2572_v19, %v2571_v48 }
 0x41d   :  { %v1339_v20 = vpack.c.bf16 %v2573_v1, %v2570_v57 }
 0x41f   :  { %2763 = vmatmul.mubr.bf16.gmra.mxu1 %v1339_v20 }
 0x420   :  { %2782 = vmatprep.mubr.bf16.mxu1 %v3505_v7 }
 0x427   :  { %2783 = vmatmul.mubr.bf16.vlgmr.msra.gmra.mxu1 %v3503_v38 }
 0x428   :  { %2786 = vmatprep.mubr.bf16.mxu1 %v3515_v44 }
 0x42f   :  { %2787 = vmatmul.mubr.bf16.gmra.mxu1 %v3513_v9 }
 0x430   :  { %2790 = vmatprep.mubr.bf16.mxu1 %v3594_v35 }
 0x437   :  { %2791 = vmatmul.mubr.bf16.gmra.mxu1 %v3582_v60 }
 0x438   :  { %2794 = vmatprep.mubr.bf16.mxu1 %v3570_v40 }
 0x43f   :  { %2795 = vmatmul.mubr.bf16.gmra.mxu1 %v3555_v59 }
 0x440   :  { %2798 = vmatprep.mubr.bf16.mxu1 %v3616_v63 }
 0x447   :  { %2799 = vmatmul.mubr.bf16.gmra.mxu1 %v3612_v8 }
 0x448   :  { %2802 = vmatprep.mubr.bf16.mxu1 %v3607_v27 }
 0x44f   :  { %2803 = vmatmul.mubr.bf16.gmra.mxu1 %v3599_v2 }
 0x450   :  { %2806 = vmatprep.mubr.bf16.mxu1 %v3587_v5 }
 0x457   :  { %2807 = vmatmul.mubr.bf16.gmra.mxu1 %v3574_v50 }
 0x458   :  { %2810 = vmatprep.mubr.bf16.mxu1 %v3560_v47 }
 0x45f   :  { %2811 = vmatmul.mubr.bf16.gmra.mxu1 %v3551_v31 }
 0x46f   :  { %v2736_v38 = vpop.f32.mrf.mxu1 }
 0x471   :  { %v1438_v7 = vpop.f32.mrf.mxu1 }
 0x473   :  { %v2737_v9 = vpop.f32.mrf.mxu1 }
 0x475   :  { %v1441_v44 = vpop.f32.mrf.mxu1 }
 0x47f   :  { %v2740_v59 = vpop.f32.mrf.mxu1 }
 0x481   :  { %v1454_v40 = vpop.f32.mrf.mxu1 }
 0x483   :  { %v2741_v60 = vpop.f32.mrf.mxu1 }
 0x485   :  { %v1457_v35 = vpop.f32.mrf.mxu1 }
 0x48f   :  { %v2744_v8 = vpop.f32.mrf.mxu1 }
 0x491   :  { %v3665_v27 = vpop.f32.mrf.mxu1 }
 0x493   :  { %v3667_v2 = vpop.f32.mrf.mxu1 }
 0x495   :  { %v3669_v5 = vpop.f32.mrf.mxu1 }
 0x49f   :  { %v3671_v50 = vpop.f32.mrf.mxu1 }
 0x4a1   :  { %v3673_v47 = vpop.f32.mrf.mxu1 }
 0x4a3   :  { %v3675_v31 = vpop.f32.mrf.mxu1 }
 0x4a5   :  { %v3677_v63 = vpop.f32.mrf.mxu1 }
 0x4af   :  { %v3679_v24 = vpop.f32.mrf.mxu1 }
 0x4b1   :  { %v3681_v26 = vpop.f32.mrf.mxu1 }
 0x4b3   :  { %v3683_v45 = vpop.f32.mrf.mxu1 }
 0x4b5   :  { %v3685_v6 = vpop.f32.mrf.mxu1 }
 0x4bf   :  { %v3687_v14 = vpop.f32.mrf.mxu1 }
 0x4c1   :  { %v3689_v43 = vpop.f32.mrf.mxu1 }
 0x4c3   :  { %v3691_v49 = vpop.f32.mrf.mxu1 }
 0x4c5   :  { %v3693_v41 = vpop.f32.mrf.mxu1 }
 0x4cf   :  { %v3695_v0 = vpop.f32.mrf.mxu1 }
 0x4d1   :  { %v3697_v37 = vpop.f32.mrf.mxu1 }
 0x4d3   :  { %v3699_v10 = vpop.f32.mrf.mxu1 }
 0x4d5   :  { %v3701_v4 = vpop.f32.mrf.mxu1 }
 0x4df   :  { %v3703_v42 = vpop.f32.mrf.mxu1 }
 0x4e1   :  { %v3705_v52 = vpop.f32.mrf.mxu1 }
 0x4e3   :  { %v3707_v34 = vpop.f32.mrf.mxu1 }
 0x4e5   :  { %v3709_v16 = vpop.f32.mrf.mxu1 }
 0x4e7   :  { %v2784_v53 = vpop.f32.mrf.mxu1 }
 0x4e8   :  { %v1656_v36 = vadd.f32 %v2784_v53, %v2736_v38 }
 0x4e9   :  { %v1647_v11 = vpop.f32.mrf.mxu1 }
 0x4ea   :  { %v1648_v51 = vadd.f32 %v1647_v11, %v1438_v7  ;;  %v1783_v29 = vadd.f32 %v3716_v54, %v1656_v36 }
 0x4eb   :  { %v2785_v23 = vpop.f32.mrf.mxu1 }
 0x4ec   :  { %v1659_v21 = vadd.f32 %v2785_v23, %v2737_v9  ;;  %v3722_v61 = vsel %vm1815_vm0, %v1783_v29, -1e+30  ;;  %v1781_v46 = vadd.f32 %v3716_v54, %v1648_v51 }
 0x4ed   :  { %1852 = vmax.xlane.f32.xlu1 %v3722_v61  ;;  %v1650_v22 = vpop.f32.mrf.mxu1 }
 0x4ee   :  { %v1651_v13 = vadd.f32 %v1650_v22, %v1441_v44  ;;  %v3728_v62 = vsel %vm1815_vm0, %v1781_v46, -1e+30  ;;  %v1784_v33 = vadd.f32 %v3716_v54, %v1659_v21 }
 0x4ef   :  { %v2788_v55 = vpop.f32.mrf.mxu1  ;;  %1848 = vmax.xlane.f32.xlu0 %v3728_v62 }
 0x4f0   :  { %v1672_v56 = vadd.f32 %v2788_v55, %v2740_v59  ;;  %v3734_v17 = vsel %vm1815_vm0, %v1784_v33, -1e+30  ;;  %v1782_v25 = vadd.f32 %v3716_v54, %v1651_v13 }
 0x4f1   :  { %1854 = vmax.xlane.f32.xlu1 %v3734_v17  ;;  %v1663_v32 = vpop.f32.mrf.mxu1 }
 0x4f2   :  { %v1664_v18 = vadd.f32 %v1663_v32, %v1454_v40  ;;  %v3740_v12 = vsel %vm1815_vm0, %v1782_v25, -1e+30  ;;  %v1787_v30 = vadd.f32 %v3716_v54, %v1672_v56 }
 0x4f3   :  { %v2789_v28 = vpop.f32.mrf.mxu1  ;;  %1850 = vmax.xlane.f32.xlu0 %v3740_v12 }
 0x4f4   :  { %v1675_v3 = vadd.f32 %v2789_v28, %v2741_v60  ;;  %v3746_v19 = vsel %vm1815_vm0, %v1787_v30, -1e+30  ;;  %v1785_v1 = vadd.f32 %v3716_v54, %v1664_v18 }
 0x4f5   :  { %v1666_v15 = vpop.f32.mrf.mxu1 }
 0x4f6   :  { %v1667_v48 = vadd.f32 %v1666_v15, %v1457_v35  ;;  %v1788_v57 = vadd.f32 %v3716_v54, %v1675_v3  ;;  %v3760_v40 = vsel %vm1815_vm0, %v1785_v1, -1e+30 }
 0x4f7   :  { %v2792_v20 = vpop.f32.mrf.mxu1  ;;  %1860 = vmax.xlane.f32.xlu0 %v3746_v19 }
 0x4f8   :  { %v1688_v38 = vadd.f32 %v2792_v20, %v2744_v8  ;;  %v3753_v7 = vsel %vm1815_vm0, %v1788_v57, -1e+30  ;;  %v1786_v9 = vadd.f32 %v3716_v54, %v1667_v48 }
 0x4f9   :  { %1862 = vmax.xlane.f32.xlu1 %v3753_v7  ;;  %v1679_v44 = vpop.f32.mrf.mxu1 }
 0x4fa   :  { %v1680_v59 = vadd.f32 %v1679_v44, %v3665_v27  ;;  %v1791_v60 = vadd.f32 %v3716_v54, %v1688_v38  ;;  %v3767_v58 = vsel %vm1815_vm0, %v1786_v9, -1e+30 }
 0x4fb   :  { %v2793_v35 = vpop.f32.mrf.mxu1  ;;  %1856 = vmax.xlane.f32.xlu0 %v3760_v40 }
 0x4fc   :  { %v1691_v8 = vadd.f32 %v2793_v35, %v3667_v2  ;;  %v3773_v36 = vsel %vm1815_vm0, %v1791_v60, -1e+30  ;;  %v1789_v51 = vadd.f32 %v3716_v54, %v1680_v59 }
 0x4fd   :  { %v1682_v53 = vpop.f32.mrf.mxu1  ;;  %1858 = vmax.xlane.f32.xlu1 %v3767_v58 }
 0x4fe   :  { %v1683_v27 = vadd.f32 %v1682_v53, %v3669_v5  ;;  %v1792_v11 = vadd.f32 %v3716_v54, %v1691_v8  ;;  %v3788_v22 = vsel %vm1815_vm0, %v1789_v51, -1e+30 }
 0x4ff   :  { %v2796_v29 = vpop.f32.mrf.mxu1  ;;  %1868 = vmax.xlane.f32.xlu0 %v3773_v36 }
 0x500   :  { %v1704_v2 = vadd.f32 %v2796_v29, %v3671_v50  ;;  %v3781_v23 = vsel %vm1815_vm0, %v1792_v11, -1e+30  ;;  %v1790_v21 = vadd.f32 %v3716_v54, %v1683_v27 }
 0x501   :  { %v1695_v5 = vpop.f32.mrf.mxu1  ;;  %1870 = vmax.xlane.f32.xlu1 %v3781_v23 }
 0x502   :  { %v1696_v46 = vadd.f32 %v1695_v5, %v3673_v47  ;;  %v1795_v13 = vadd.f32 %v3716_v54, %v1704_v2  ;;  %v3795_v55 = vsel %vm1815_vm0, %v1790_v21, -1e+30 }
 0x503   :  { %v2797_v33 = vpop.f32.mrf.mxu1  ;;  %1864 = vmax.xlane.f32.xlu0 %v3788_v22 }
 0x504   :  { %v1707_v50 = vadd.f32 %v2797_v33, %v3675_v31  ;;  %v3801_v25 = vsel %vm1815_vm0, %v1795_v13, -1e+30  ;;  %v1793_v18 = vadd.f32 %v3716_v54, %v1696_v46 }
 0x505   :  { %v1698_v56 = vpop.f32.mrf.mxu1  ;;  %1866 = vmax.xlane.f32.xlu1 %v3795_v55 }
 0x506   :  { %v1699_v47 = vadd.f32 %v1698_v56, %v3677_v63  ;;  %v1796_v32 = vadd.f32 %v3716_v54, %v1707_v50  ;;  %v3816_v48 = vsel %vm1815_vm0, %v1793_v18, -1e+30 }
 0x507   :  { %v2800_v30 = vpop.f32.mrf.mxu1  ;;  %1876 = vmax.xlane.f32.xlu0 %v3801_v25 }
 0x508   :  { %v1720_v31 = vadd.f32 %v2800_v30, %v3679_v24  ;;  %v3809_v28 = vsel %vm1815_vm0, %v1796_v32, -1e+30  ;;  %v1794_v3 = vadd.f32 %v3716_v54, %v1699_v47 }
 0x509   :  { %v1711_v63 = vpop.f32.mrf.mxu1  ;;  %1878 = vmax.xlane.f32.xlu1 %v3809_v28 }
 0x50a   :  { %v1712_v15 = vadd.f32 %v1711_v63, %v3681_v26  ;;  %v1799_v57 = vadd.f32 %v3716_v54, %v1720_v31  ;;  %v3823_v20 = vsel %vm1815_vm0, %v1794_v3, -1e+30 }
 0x50b   :  { %v2801_v1 = vpop.f32.mrf.mxu1  ;;  %1872 = vmax.xlane.f32.xlu0 %v3816_v48 }
 0x50c   :  { %v1723_v24 = vadd.f32 %v2801_v1, %v3683_v45  ;;  %v3829_v9 = vsel %vm1815_vm0, %v1799_v57, -1e+30  ;;  %v1797_v59 = vadd.f32 %v3716_v54, %v1712_v15 }
 0x50d   :  { %v1714_v38 = vpop.f32.mrf.mxu1  ;;  %1874 = vmax.xlane.f32.xlu1 %v3823_v20 }
 0x50e   :  { %v1715_v26 = vadd.f32 %v1714_v38, %v3685_v6  ;;  %v1800_v44 = vadd.f32 %v3716_v54, %v1723_v24  ;;  %v3844_v27 = vsel %vm1815_vm0, %v1797_v59, -1e+30 }
 0x50f   :  { %v2804_v60 = vpop.f32.mrf.mxu1  ;;  %1884 = vmax.xlane.f32.xlu0 %v3829_v9 }
 0x510   :  { %v1736_v45 = vadd.f32 %v2804_v60, %v3687_v14  ;;  %v3837_v35 = vsel %vm1815_vm0, %v1800_v44, -1e+30  ;;  %v1798_v8 = vadd.f32 %v3716_v54, %v1715_v26 }
 0x511   :  { %v1727_v6 = vpop.f32.mrf.mxu1  ;;  %1886 = vmax.xlane.f32.xlu1 %v3837_v35 }
 0x512   :  { %v1728_v53 = vadd.f32 %v1727_v6, %v3689_v43  ;;  %v1803_v11 = vadd.f32 %v3716_v54, %v1736_v45  ;;  %v3851_v29 = vsel %vm1815_vm0, %v1798_v8, -1e+30 }
 0x513   :  { %v2805_v51 = vpop.f32.mrf.mxu1  ;;  %1880 = vmax.xlane.f32.xlu0 %v3844_v27 }
 0x514   :  { %v1739_v14 = vadd.f32 %v2805_v51, %v3691_v49  ;;  %v3857_v21 = vsel %vm1815_vm0, %v1803_v11, -1e+30  ;;  %v1801_v46 = vadd.f32 %v3716_v54, %v1728_v53 }
 0x515   :  { %v1730_v2 = vpop.f32.mrf.mxu1  ;;  %1882 = vmax.xlane.f32.xlu1 %v3851_v29 }
 0x516   :  { %v1731_v43 = vadd.f32 %v1730_v2, %v3693_v41  ;;  %v1804_v5 = vadd.f32 %v3716_v54, %v1739_v14  ;;  %v3872_v47 = vsel %vm1815_vm0, %v1801_v46, -1e+30 }
 0x517   :  { %v2808_v13 = vpop.f32.mrf.mxu1  ;;  %1892 = vmax.xlane.f32.xlu0 %v3857_v21 }
 0x518   :  { %v1752_v49 = vadd.f32 %v2808_v13, %v3695_v0  ;;  %v3865_v33 = vsel %vm1815_vm0, %v1804_v5, -1e+30  ;;  %v1802_v50 = vadd.f32 %v3716_v54, %v1731_v43 }
 0x519   :  { %v1743_v41 = vpop.f32.mrf.mxu1  ;;  %1894 = vmax.xlane.f32.xlu1 %v3865_v33 }
 0x51a   :  { %v1744_v56 = vadd.f32 %v1743_v41, %v3697_v37  ;;  %v1807_v32 = vadd.f32 %v3716_v54, %v1752_v49  ;;  %v3879_v30 = vsel %vm1815_vm0, %v1802_v50, -1e+30 }
 0x51b   :  { %v2809_v18 = vpop.f32.mrf.mxu1  ;;  %1888 = vmax.xlane.f32.xlu0 %v3872_v47 }
 0x51c   :  { %v1755_v0 = vadd.f32 %v2809_v18, %v3699_v10  ;;  %v3885_v3 = vsel %vm1815_vm0, %v1807_v32, -1e+30  ;;  %v1805_v15 = vadd.f32 %v3716_v54, %v1744_v56 }
 0x51d   :  { %v1746_v31 = vpop.f32.mrf.mxu1  ;;  %1890 = vmax.xlane.f32.xlu1 %v3879_v30 }
 0x51e   :  { %v1747_v37 = vadd.f32 %v1746_v31, %v3701_v4  ;;  %v1808_v63 = vadd.f32 %v3716_v54, %v1755_v0  ;;  %v3900_v26 = vsel %vm1815_vm0, %v1805_v15, -1e+30 }
 0x51f   :  { %v2812_v57 = vpop.f32.mrf.mxu1  ;;  %1900 = vmax.xlane.f32.xlu0 %v3885_v3 }
 0x520   :  { %v3892_v10 = vsel %vm1815_vm0, %v1808_v63, -1e+30  ;;  %v1806_v1 = vadd.f32 %v3716_v54, %v1747_v37  ;;  %v1768_v4 = vadd.f32 %v2812_v57, %v3703_v42 }
 0x521   :  { %v1759_v24 = vpop.f32.mrf.mxu1  ;;  %1902 = vmax.xlane.f32.xlu1 %v3892_v10 }
 0x522   :  { %v1760_v38 = vadd.f32 %v1759_v24, %v3705_v52  ;;  %v3906_v60 = vsel %vm1815_vm0, %v1806_v1, -1e+30  ;;  %v1811_v6 = vadd.f32 %v3716_v54, %v1768_v4 }
 0x523   :  { %v2813_v44 = vpop.f32.mrf.mxu1  ;;  %1896 = vmax.xlane.f32.xlu0 %v3900_v26 }
 0x524   :  { %v1771_v59 = vadd.f32 %v2813_v44, %v3707_v34  ;;  %v1809_v45 = vadd.f32 %v3716_v54, %v1760_v38 }
 0x525   :  { %v1762_v8 = vpop.f32.mrf.mxu1  ;;  %1898 = vmax.xlane.f32.xlu1 %v3906_v60 }
 0x526   :  { %v1763_v42 = vadd.f32 %v1762_v8, %v3709_v16  ;;  %v3913_v52 = vsel %vm1815_vm0, %v1809_v45, -1e+30  ;;  %v1812_v53 = vadd.f32 %v3716_v54, %v1771_v59  ;;  %v3929_v16 = vsel %vm1815_vm0, %v1811_v6, -1e+30 }
 0x527   :  { %1904 = vmax.xlane.f32.xlu0 %v3913_v52 }
 0x528   :  { %v1810_v34 = vadd.f32 %v3716_v54, %v1763_v42  ;;  %v3921_v11 = vsel %vm1815_vm0, %v1812_v53, -1e+30 }
 0x52a   :  { %v3925_v51 = vsel %vm1815_vm0, %v1810_v34, -1e+30 }
 0x52b   :  { %1906 = vmax.xlane.f32.xlu1 %v3925_v51  ;;  %1908 = vmax.xlane.f32.xlu0 %v3929_v16 }
 0x52f   :  { %1910 = vmax.xlane.f32.xlu1 %v3921_v11 }
 0x576   :  { %v1853_v14 = vpop.xlane.xlu1 %1852 }
 0x577   :  { %v3935_v54 = vsub.f32 %v3722_v61, %v1853_v14 }
 0x578   :  { %v1849_v2 = vpop.xlane.xlu0 %1848 }
 0x579   :  { %v1948_v43 = vmul.f32 1.442695, %v3935_v54  ;;  %v3939_v5 = vsub.f32 %v3728_v62, %v1849_v2 }
 0x57a   :  { %v1855_v46 = vpop.xlane.xlu1 %1854 }
 0x57b   :  { %2921 = vpow2.f32 %v1948_v43  ;;  %v1944_v39 = vmul.f32 1.442695, %v3939_v5  ;;  %v3943_v13 = vsub.f32 %v3734_v17, %v1855_v46 }
 0x57c   :  { %v1851_v49 = vpop.xlane.xlu0 %1850 }
 0x57d   :  { %v1950_v50 = vmul.f32 1.442695, %v3943_v13  ;;  %v3947_v41 = vsub.f32 %v3740_v12, %v1851_v49  ;;  %2923 = vpow2.f32 %v1944_v39 }
 0x57f   :  { %2925 = vpow2.f32 %v1950_v50  ;;  %v1946_v61 = vmul.f32 1.442695, %v3947_v41 }
 0x580   :  { %v1861_v56 = vpop.xlane.xlu0 %1860 }
 0x581   :  { %v3951_v62 = vsub.f32 %v3746_v19, %v1861_v56  ;;  %2927 = vpow2.f32 %v1946_v61 }
 0x582   :  { %v1863_v32 = vpop.xlane.xlu1 %1862 }
 0x583   :  { %v1956_v18 = vmul.f32 1.442695, %v3951_v62  ;;  %v3955_v17 = vsub.f32 %v3753_v7, %v1863_v32 }
 0x584   :  { %v1857_v0 = vpop.xlane.xlu0 %1856 }
 0x585   :  { %2929 = vpow2.f32 %v1956_v18  ;;  %v1958_v12 = vmul.f32 1.442695, %v3955_v17  ;;  %v3959_v31 = vsub.f32 %v3760_v40, %v1857_v0 }
 0x586   :  { %v1859_v37 = vpop.xlane.xlu1 %1858 }
 0x587   :  { %2931 = vpow2.f32 %v1958_v12  ;;  %v1952_v63 = vmul.f32 1.442695, %v3959_v31  ;;  %v3963_v19 = vsub.f32 %v3767_v58, %v1859_v37 }
 0x588   :  { %v2922_v15 = vpop.eup %2921  ;;  %v1869_v57 = vpop.xlane.xlu0 %1868 }
 0x589   :  { %2933 = vpow2.f32 %v1952_v63  ;;  %v1954_v7 = vmul.f32 1.442695, %v3963_v19  ;;  %v3967_v1 = vsub.f32 %v3773_v36, %v1869_v57  ;;  %2012 = vadd.xlane.f32.xlu0 %v2922_v15 }
 0x58a   :  { %v1871_v24 = vpop.xlane.xlu1 %1870  ;;  %v2924_v4 = vpop.eup %2923 }
 0x58b   :  { %2935 = vpow2.f32 %v1954_v7  ;;  %v1964_v40 = vmul.f32 1.442695, %v3967_v1  ;;  %v3971_v38 = vsub.f32 %v3781_v23, %v1871_v24 }
 0x58c   :  { %v2926_v44 = vpop.eup %2925  ;;  %v1865_v58 = vpop.xlane.xlu0 %1864 }
 0x58d   :  { %2937 = vpow2.f32 %v1964_v40  ;;  %v1966_v59 = vmul.f32 1.442695, %v3971_v38  ;;  %v3975_v45 = vsub.f32 %v3788_v22, %v1865_v58  ;;  %2014 = vadd.xlane.f32.xlu1 %v2926_v44  ;;  %2008 = vadd.xlane.f32.xlu0 %v2924_v4 }
 0x58e   :  { %v1867_v36 = vpop.xlane.xlu1 %1866  ;;  %v2928_v6 = vpop.eup %2927 }
 0x58f   :  { %2939 = vpow2.f32 %v1966_v59  ;;  %v1960_v8 = vmul.f32 1.442695, %v3975_v45  ;;  %v3979_v42 = vsub.f32 %v3795_v55, %v1867_v36 }
 0x590   :  { %v1877_v23 = vpop.xlane.xlu0 %1876 }
 0x591   :  { %2941 = vpow2.f32 %v1960_v8  ;;  %v1962_v53 = vmul.f32 1.442695, %v3979_v42  ;;  %v3983_v34 = vsub.f32 %v3801_v25, %v1877_v23  ;;  %2010 = vadd.xlane.f32.xlu1 %v2928_v6 }
 0x592   :  { %v2930_v22 = vpop.eup %2929  ;;  %v1879_v14 = vpop.xlane.xlu1 %1878 }
 0x593   :  { %2943 = vpow2.f32 %v1962_v53  ;;  %v1972_v2 = vmul.f32 1.442695, %v3983_v34  ;;  %v3987_v43 = vsub.f32 %v3809_v28, %v1879_v14  ;;  %2020 = vadd.xlane.f32.xlu0 %v2930_v22 }
 0x594   :  { %v2932_v55 = vpop.eup %2931  ;;  %v1873_v46 = vpop.xlane.xlu0 %1872 }
 0x595   :  { %2945 = vpow2.f32 %v1972_v2  ;;  %v1974_v39 = vmul.f32 1.442695, %v3987_v43  ;;  %v3991_v49 = vsub.f32 %v3816_v48, %v1873_v46  ;;  %2022 = vadd.xlane.f32.xlu1 %v2932_v55 }
 0x596   :  { %v2934_v25 = vpop.eup %2933  ;;  %v1875_v50 = vpop.xlane.xlu1 %1874 }
 0x597   :  { %2947 = vpow2.f32 %v1974_v39  ;;  %v1968_v61 = vmul.f32 1.442695, %v3991_v49  ;;  %v3995_v56 = vsub.f32 %v3823_v20, %v1875_v50  ;;  %2016 = vadd.xlane.f32.xlu0 %v2934_v25 }
 0x598   :  { %v2936_v28 = vpop.eup %2935  ;;  %v1885_v32 = vpop.xlane.xlu0 %1884 }
 0x599   :  { %2949 = vpow2.f32 %v1968_v61  ;;  %v1970_v18 = vmul.f32 1.442695, %v3995_v56  ;;  %v3999_v0 = vsub.f32 %v3829_v9, %v1885_v32  ;;  %2018 = vadd.xlane.f32.xlu1 %v2936_v28 }
 0x59a   :  { %v2938_v48 = vpop.eup %2937  ;;  %v1887_v12 = vpop.xlane.xlu1 %1886 }
 0x59b   :  { %2951 = vpow2.f32 %v1970_v18  ;;  %v1980_v37 = vmul.f32 1.442695, %v3999_v0  ;;  %v4003_v63 = vsub.f32 %v3837_v35, %v1887_v12  ;;  %2028 = vadd.xlane.f32.xlu0 %v2938_v48 }
 0x59c   :  { %v2940_v20 = vpop.eup %2939  ;;  %v1881_v15 = vpop.xlane.xlu0 %1880 }
 0x59d   :  { %2953 = vpow2.f32 %v1980_v37  ;;  %v1982_v57 = vmul.f32 1.442695, %v4003_v63  ;;  %v4007_v7 = vsub.f32 %v3844_v27, %v1881_v15  ;;  %2030 = vadd.xlane.f32.xlu1 %v2940_v20 }
 0x59e   :  { %v2942_v9 = vpop.eup %2941  ;;  %v1883_v24 = vpop.xlane.xlu1 %1882 }
 0x59f   :  { %2955 = vpow2.f32 %v1982_v57  ;;  %v1976_v4 = vmul.f32 1.442695, %v4007_v7  ;;  %v4011_v40 = vsub.f32 %v3851_v29, %v1883_v24  ;;  %2024 = vadd.xlane.f32.xlu0 %v2942_v9 }
 0x5a0   :  { %v2944_v35 = vpop.eup %2943  ;;  %v1893_v44 = vpop.xlane.xlu0 %1892 }
 0x5a1   :  { %2957 = vpow2.f32 %v1976_v4  ;;  %v1978_v58 = vmul.f32 1.442695, %v4011_v40  ;;  %v4015_v59 = vsub.f32 %v3857_v21, %v1893_v44  ;;  %2026 = vadd.xlane.f32.xlu1 %v2944_v35 }
 0x5a2   :  { %v2946_v27 = vpop.eup %2945  ;;  %v1895_v36 = vpop.xlane.xlu1 %1894 }
 0x5a3   :  { %2959 = vpow2.f32 %v1978_v58  ;;  %v1988_v8 = vmul.f32 1.442695, %v4015_v59  ;;  %v4019_v6 = vsub.f32 %v3865_v33, %v1895_v36  ;;  %2036 = vadd.xlane.f32.xlu0 %v2946_v27 }
 0x5a4   :  { %v2948_v29 = vpop.eup %2947  ;;  %v1889_v23 = vpop.xlane.xlu0 %1888 }
 0x5a5   :  { %2961 = vpow2.f32 %v1988_v8  ;;  %v1990_v53 = vmul.f32 1.442695, %v4019_v6  ;;  %v4023_v22 = vsub.f32 %v3872_v47, %v1889_v23  ;;  %2038 = vadd.xlane.f32.xlu1 %v2948_v29 }
 0x5a6   :  { %v2950_v21 = vpop.eup %2949  ;;  %v1891_v14 = vpop.xlane.xlu1 %1890 }
 0x5a7   :  { %2963 = vpow2.f32 %v1990_v53  ;;  %v1984_v2 = vmul.f32 1.442695, %v4023_v22  ;;  %v4027_v55 = vsub.f32 %v3879_v30, %v1891_v14  ;;  %2032 = vadd.xlane.f32.xlu0 %v2950_v21 }
 0x5a8   :  { %v2952_v33 = vpop.eup %2951  ;;  %v1901_v46 = vpop.xlane.xlu0 %1900 }
 0x5a9   :  { %2965 = vpow2.f32 %v1984_v2  ;;  %v1986_v39 = vmul.f32 1.442695, %v4027_v55  ;;  %v4031_v25 = vsub.f32 %v3885_v3, %v1901_v46  ;;  %2034 = vadd.xlane.f32.xlu1 %v2952_v33 }
 0x5aa   :  { %v2954_v47 = vpop.eup %2953  ;;  %v1903_v50 = vpop.xlane.xlu1 %1902 }
 0x5ab   :  { %2967 = vpow2.f32 %v1986_v39  ;;  %v1996_v61 = vmul.f32 1.442695, %v4031_v25  ;;  %v4035_v28 = vsub.f32 %v3892_v10, %v1903_v50  ;;  %2044 = vadd.xlane.f32.xlu0 %v2954_v47 }
 0x5ac   :  { %v2956_v30 = vpop.eup %2955  ;;  %v1897_v32 = vpop.xlane.xlu0 %1896 }
 0x5ad   :  { %2969 = vpow2.f32 %v1996_v61  ;;  %v1998_v18 = vmul.f32 1.442695, %v4035_v28  ;;  %v4039_v48 = vsub.f32 %v3900_v26, %v1897_v32  ;;  %2046 = vadd.xlane.f32.xlu1 %v2956_v30 }
 0x5ae   :  { %v2958_v3 = vpop.eup %2957  ;;  %v1899_v12 = vpop.xlane.xlu1 %1898 }
 0x5af   :  { %2971 = vpow2.f32 %v1998_v18  ;;  %v1992_v37 = vmul.f32 1.442695, %v4039_v48  ;;  %v4043_v20 = vsub.f32 %v3906_v60, %v1899_v12  ;;  %2040 = vadd.xlane.f32.xlu0 %v2958_v3 }
 0x5b0   :  { %v2960_v10 = vpop.eup %2959  ;;  %v1905_v15 = vpop.xlane.xlu0 %1904 }
 0x5b1   :  { %2973 = vpow2.f32 %v1992_v37  ;;  %v1994_v57 = vmul.f32 1.442695, %v4043_v20  ;;  %v4047_v9 = vsub.f32 %v3913_v52, %v1905_v15  ;;  %2042 = vadd.xlane.f32.xlu1 %v2960_v10 }
 0x5b2   :  { %v2962_v26 = vpop.eup %2961 }
 0x5b3   :  { %2975 = vpow2.f32 %v1994_v57  ;;  %v2000_v24 = vmul.f32 1.442695, %v4047_v9  ;;  %2052 = vadd.xlane.f32.xlu0 %v2962_v26 }
 0x5b4   :  { %v2964_v4 = vpop.eup %2963  ;;  %v1907_v35 = vpop.xlane.xlu1 %1906 }
 0x5b5   :  { %v1909_v44 = vpop.xlane.xlu0 %1908  ;;  %2977 = vpow2.f32 %v2000_v24  ;;  %v4051_v60 = vsub.f32 %v3925_v51, %v1907_v35  ;;  %2054 = vadd.xlane.f32.xlu1 %v2964_v4 }
 0x5b6   :  { %v4054_v58 = vsub.f32 %v3929_v16, %v1909_v44  ;;  %v2966_v27 = vpop.eup %2965 }
 0x5b7   :  { %v2002_v52 = vmul.f32 1.442695, %v4051_v60  ;;  %2048 = vadd.xlane.f32.xlu0 %v2966_v27 }
 0x5b8   :  { %v2004_v36 = vmul.f32 1.442695, %v4054_v58  ;;  %v2968_v8 = vpop.eup %2967  ;;  %v1911_v29 = vpop.xlane.xlu1 %1910 }
 0x5b9   :  { %2979 = vpow2.f32 %v2002_v52  ;;  %v4059_v23 = vsub.f32 %v3921_v11, %v1911_v29  ;;  %2050 = vadd.xlane.f32.xlu1 %v2968_v8 }
 0x5ba   :  { %v2970_v53 = vpop.eup %2969  ;;  %2981 = vpow2.f32 %v2004_v36 }
 0x5bb   :  { %v2006_v51 = vmul.f32 1.442695, %v4059_v23  ;;  %2060 = vadd.xlane.f32.xlu0 %v2970_v53 }
 0x5bc   :  { %v2972_v16 = vpop.eup %2971 }
 0x5bd   :  { %2983 = vpow2.f32 %v2006_v51  ;;  %2062 = vadd.xlane.f32.xlu1 %v2972_v16 }
 0x5be   :  { %v2974_v21 = vpop.eup %2973 }
 0x5bf   :  { %2056 = vadd.xlane.f32.xlu0 %v2974_v21 }
 0x5c0   :  { %v2976_v14 = vpop.eup %2975 }
 0x5c1   :  { %2058 = vadd.xlane.f32.xlu1 %v2976_v14 }
 0x5c2   :  { %v2978_v2 = vpop.eup %2977 }
 0x5c3   :  { %2064 = vadd.xlane.f32.xlu0 %v2978_v2 }
 0x5c6   :  { %v2980_v33 = vpop.eup %2979 }
 0x5c7   :  { %v2982_v46 = vpop.eup %2981  ;;  %2066 = vadd.xlane.f32.xlu1 %v2980_v33 }
 0x5c8   :  { %2068 = vadd.xlane.f32.xlu0 %v2982_v46 }
 0x5ca   :  { %v2984_v11 = vpop.eup %2983 }
 0x5cb   :  { %2070 = vadd.xlane.f32.xlu1 %v2984_v11 }
 0x612   :  { %v2013_v39 = vpop.xlane.xlu0 %2012 }
 0x613   :  { %2985 = vlog2.f32 %v2013_v39 }
 0x616   :  { %v2015_v47 = vpop.xlane.xlu1 %2014  ;;  %v2009_v50 = vpop.xlane.xlu0 %2008 }
 0x617   :  { %2987 = vlog2.f32 %v2015_v47 }
 0x618   :  { %2989 = vlog2.f32 %v2009_v50 }
 0x61a   :  { %v2011_v61 = vpop.xlane.xlu1 %2010 }
 0x61b   :  { %2991 = vlog2.f32 %v2011_v61 }
 0x61c   :  { %v2021_v30 = vpop.xlane.xlu0 %2020 }
 0x61d   :  { %2993 = vlog2.f32 %v2021_v30 }
 0x61e   :  { %v2023_v32 = vpop.xlane.xlu1 %2022 }
 0x61f   :  { %2995 = vlog2.f32 %v2023_v32 }
 0x620   :  { %v2986_v18 = vpop.eup %2985  ;;  %v2017_v3 = vpop.xlane.xlu0 %2016 }
 0x621   :  { %v2077_v12 = vmul.f32 0.6931472, %v2986_v18  ;;  %2997 = vlog2.f32 %v2017_v3 }
 0x622   :  { %v2019_v37 = vpop.xlane.xlu1 %2018 }
 0x623   :  { %v2138_v10 = vsub.f32 %v3935_v54, %v2077_v12  ;;  %2999 = vlog2.f32 %v2019_v37 }
 0x624   :  { %v2988_v15 = vpop.eup %2987  ;;  %v2029_v57 = vpop.xlane.xlu0 %2028 }
 0x625   :  { %v2990_v26 = vpop.eup %2989  ;;  %2170 = vst [vmem:[#allocation13 + $0x10] sm:$0xff] %v2138_v10  ;;  %v2079_v24 = vmul.f32 0.6931472, %v2988_v15  ;;  %3001 = vlog2.f32 %v2029_v57 }
 0x626   :  { %v2073_v4 = vmul.f32 0.6931472, %v2990_v26  ;;  %v2031_v35 = vpop.xlane.xlu1 %2030 }
 0x627   :  { %v2139_v44 = vsub.f32 %v3943_v13, %v2079_v24  ;;  %3003 = vlog2.f32 %v2031_v35 }
 0x628   :  { %v2992_v27 = vpop.eup %2991  ;;  %v2136_v52 = vsub.f32 %v3939_v5, %v2073_v4  ;;  %v2025_v36 = vpop.xlane.xlu0 %2024 }
 0x629   :  { %2171 = vst [vmem:[#allocation13 + $0x18] sm:$0xff] %v2139_v44  ;;  %v2075_v8 = vmul.f32 0.6931472, %v2992_v27  ;;  %3005 = vlog2.f32 %v2025_v36 }
 0x62a   :  { %v2994_v54 = vpop.eup %2993  ;;  %2168 = vst [vmem:[#allocation13] sm:$0xff] %v2136_v52  ;;  %v2027_v29 = vpop.xlane.xlu1 %2026 }
 0x62b   :  { %v2137_v53 = vsub.f32 %v3947_v41, %v2075_v8  ;;  %v2085_v51 = vmul.f32 0.6931472, %v2994_v54  ;;  %3007 = vlog2.f32 %v2027_v29 }
 0x62c   :  { %v2996_v16 = vpop.eup %2995  ;;  %v2037_v21 = vpop.xlane.xlu0 %2036 }
 0x62d   :  { %2169 = vst [vmem:[#allocation13 + $0x8] sm:$0xff] %v2137_v53  ;;  %v2142_v13 = vsub.f32 %v3951_v62, %v2085_v51  ;;  %v2087_v14 = vmul.f32 0.6931472, %v2996_v16  ;;  %3009 = vlog2.f32 %v2037_v21 }
 0x62e   :  { %v2998_v2 = vpop.eup %2997  ;;  %v2039_v5 = vpop.xlane.xlu1 %2038 }
 0x62f   :  { %2174 = vst [vmem:[#allocation13 + $0x30] sm:$0xff] %v2142_v13  ;;  %v2143_v33 = vsub.f32 %v3955_v17, %v2087_v14  ;;  %v2081_v46 = vmul.f32 0.6931472, %v2998_v2  ;;  %3011 = vlog2.f32 %v2039_v5 }
 0x630   :  { %v3000_v11 = vpop.eup %2999  ;;  %v2033_v39 = vpop.xlane.xlu0 %2032 }
 0x631   :  { %2175 = vst [vmem:[#allocation13 + $0x38] sm:$0xff] %v2143_v33  ;;  %v2140_v41 = vsub.f32 %v3959_v31, %v2081_v46  ;;  %v2083_v47 = vmul.f32 0.6931472, %v3000_v11  ;;  %3013 = vlog2.f32 %v2033_v39 }
 0x632   :  { %v3002_v50 = vpop.eup %3001  ;;  %v2035_v61 = vpop.xlane.xlu1 %2034 }
 0x633   :  { %2172 = vst [vmem:[#allocation13 + $0x20] sm:$0xff] %v2140_v41  ;;  %v2141_v62 = vsub.f32 %v3963_v19, %v2083_v47  ;;  %v2093_v30 = vmul.f32 0.6931472, %v3002_v50  ;;  %3015 = vlog2.f32 %v2035_v61 }
 0x634   :  { %v3004_v32 = vpop.eup %3003  ;;  %v2045_v18 = vpop.xlane.xlu0 %2044 }
 0x635   :  { %2173 = vst [vmem:[#allocation13 + $0x28] sm:$0xff] %v2141_v62  ;;  %v2146_v17 = vsub.f32 %v3967_v1, %v2093_v30  ;;  %v2095_v3 = vmul.f32 0.6931472, %v3004_v32  ;;  %3017 = vlog2.f32 %v2045_v18 }
 0x636   :  { %v3006_v12 = vpop.eup %3005  ;;  %v2047_v37 = vpop.xlane.xlu1 %2046 }
 0x637   :  { %2178 = vst [vmem:[#allocation13 + $0x50] sm:$0xff] %v2146_v17  ;;  %v2147_v31 = vsub.f32 %v3971_v38, %v2095_v3  ;;  %v2089_v10 = vmul.f32 0.6931472, %v3006_v12  ;;  %3019 = vlog2.f32 %v2047_v37 }
 0x638   :  { %v3008_v15 = vpop.eup %3007  ;;  %v2041_v57 = vpop.xlane.xlu0 %2040 }
 0x639   :  { %2179 = vst [vmem:[#allocation13 + $0x58] sm:$0xff] %v2147_v31  ;;  %v2144_v19 = vsub.f32 %v3975_v45, %v2089_v10  ;;  %v2091_v26 = vmul.f32 0.6931472, %v3008_v15  ;;  %3021 = vlog2.f32 %v2041_v57 }
 0x63a   :  { %v3010_v24 = vpop.eup %3009  ;;  %v2043_v4 = vpop.xlane.xlu1 %2042 }
 0x63b   :  { %2176 = vst [vmem:[#allocation13 + $0x40] sm:$0xff] %v2144_v19  ;;  %v2145_v1 = vsub.f32 %v3979_v42, %v2091_v26  ;;  %v2101_v35 = vmul.f32 0.6931472, %v3010_v24  ;;  %3023 = vlog2.f32 %v2043_v4 }
 0x63c   :  { %v3012_v44 = vpop.eup %3011  ;;  %v2053_v27 = vpop.xlane.xlu0 %2052 }
 0x63d   :  { %2177 = vst [vmem:[#allocation13 + $0x48] sm:$0xff] %v2145_v1  ;;  %v2150_v38 = vsub.f32 %v3983_v34, %v2101_v35  ;;  %v2103_v52 = vmul.f32 0.6931472, %v3012_v44  ;;  %3025 = vlog2.f32 %v2053_v27 }
 0x63e   :  { %v3014_v36 = vpop.eup %3013  ;;  %v2055_v8 = vpop.xlane.xlu1 %2054 }
 0x63f   :  { %2182 = vst [vmem:[#allocation13 + $0x70] sm:$0xff] %v2150_v38  ;;  %v2151_v45 = vsub.f32 %v3987_v43, %v2103_v52  ;;  %v2097_v54 = vmul.f32 0.6931472, %v3014_v36  ;;  %3027 = vlog2.f32 %v2055_v8 }
 0x640   :  { %v3016_v29 = vpop.eup %3015  ;;  %v2049_v53 = vpop.xlane.xlu0 %2048 }
 0x641   :  { %2183 = vst [vmem:[#allocation13 + $0x78] sm:$0xff] %v2151_v45  ;;  %v2148_v42 = vsub.f32 %v3991_v49, %v2097_v54  ;;  %v2099_v51 = vmul.f32 0.6931472, %v3016_v29  ;;  %3029 = vlog2.f32 %v2049_v53 }
 0x642   :  { %v3018_v16 = vpop.eup %3017  ;;  %v2051_v21 = vpop.xlane.xlu1 %2050 }
 0x643   :  { %2180 = vst [vmem:[#allocation13 + $0x60] sm:$0xff] %v2148_v42  ;;  %v2149_v34 = vsub.f32 %v3995_v56, %v2099_v51  ;;  %v2109_v13 = vmul.f32 0.6931472, %v3018_v16  ;;  %3031 = vlog2.f32 %v2051_v21 }
 0x644   :  { %v3020_v14 = vpop.eup %3019  ;;  %v2061_v2 = vpop.xlane.xlu0 %2060 }
 0x645   :  { %2181 = vst [vmem:[#allocation13 + $0x68] sm:$0xff] %v2149_v34  ;;  %v2154_v43 = vsub.f32 %v3999_v0, %v2109_v13  ;;  %v2111_v5 = vmul.f32 0.6931472, %v3020_v14  ;;  %3033 = vlog2.f32 %v2061_v2 }
 0x646   :  { %v3022_v33 = vpop.eup %3021  ;;  %v2063_v46 = vpop.xlane.xlu1 %2062 }
 0x647   :  { %2186 = vst [vmem:[#allocation13 + $0x90] sm:$0xff] %v2154_v43  ;;  %v2155_v49 = vsub.f32 %v4003_v63, %v2111_v5  ;;  %v2105_v11 = vmul.f32 0.6931472, %v3022_v33  ;;  %3035 = vlog2.f32 %v2063_v46 }
 0x648   :  { %v3024_v39 = vpop.eup %3023  ;;  %v2057_v41 = vpop.xlane.xlu0 %2056 }
 0x649   :  { %2187 = vst [vmem:[#allocation13 + $0x98] sm:$0xff] %v2155_v49  ;;  %v2152_v56 = vsub.f32 %v4007_v7, %v2105_v11  ;;  %v2107_v47 = vmul.f32 0.6931472, %v3024_v39  ;;  %3037 = vlog2.f32 %v2057_v41 }
 0x64a   :  { %v3026_v50 = vpop.eup %3025  ;;  %v2059_v61 = vpop.xlane.xlu1 %2058 }
 0x64b   :  { %2184 = vst [vmem:[#allocation13 + $0x80] sm:$0xff] %v2152_v56  ;;  %v2153_v0 = vsub.f32 %v4011_v40, %v2107_v47  ;;  %v2117_v62 = vmul.f32 0.6931472, %v3026_v50  ;;  %3039 = vlog2.f32 %v2059_v61 }
 0x64c   :  { %v3028_v30 = vpop.eup %3027  ;;  %v2065_v32 = vpop.xlane.xlu0 %2064 }
 0x64d   :  { %2185 = vst [vmem:[#allocation13 + $0x88] sm:$0xff] %v2153_v0  ;;  %v2158_v63 = vsub.f32 %v4015_v59, %v2117_v62  ;;  %v2119_v18 = vmul.f32 0.6931472, %v3028_v30  ;;  %3041 = vlog2.f32 %v2065_v32 }
 0x64e   :  { %v3030_v17 = vpop.eup %3029 }
 0x64f   :  { %2190 = vst [vmem:[#allocation13 + $0xb0] sm:$0xff] %v2158_v63  ;;  %v2159_v7 = vsub.f32 %v4019_v6, %v2119_v18  ;;  %v2113_v3 = vmul.f32 0.6931472, %v3030_v17 }
 0x650   :  { %v3032_v12 = vpop.eup %3031  ;;  %v2067_v37 = vpop.xlane.xlu1 %2066 }
 0x651   :  { %2191 = vst [vmem:[#allocation13 + $0xb8] sm:$0xff] %v2159_v7  ;;  %v2156_v31 = vsub.f32 %v4023_v22, %v2113_v3  ;;  %v2115_v40 = vmul.f32 0.6931472, %v3032_v12  ;;  %3043 = vlog2.f32 %v2067_v37  ;;  %v2069_v10 = vpop.xlane.xlu0 %2068 }
 0x652   :  { %v3034_v15 = vpop.eup %3033  ;;  %3045 = vlog2.f32 %v2069_v10 }
 0x653   :  { %2188 = vst [vmem:[#allocation13 + $0xa0] sm:$0xff] %v2156_v31  ;;  %v2157_v59 = vsub.f32 %v4027_v55, %v2115_v40  ;;  %v2125_v57 = vmul.f32 0.6931472, %v3034_v15 }
 0x654   :  { %v3036_v19 = vpop.eup %3035  ;;  %v2071_v26 = vpop.xlane.xlu1 %2070 }
 0x655   :  { %2189 = vst [vmem:[#allocation13 + $0xa8] sm:$0xff] %v2157_v59  ;;  %v2162_v6 = vsub.f32 %v4031_v25, %v2125_v57  ;;  %v2127_v24 = vmul.f32 0.6931472, %v3036_v19  ;;  %3047 = vlog2.f32 %v2071_v26 }
 0x656   :  { %v3038_v4 = vpop.eup %3037 }
 0x657   :  { %2194 = vst [vmem:[#allocation13 + $0xd0] sm:$0xff] %v2162_v6  ;;  %v2163_v22 = vsub.f32 %v4035_v28, %v2127_v24  ;;  %v2121_v1 = vmul.f32 0.6931472, %v3038_v4 }
 0x658   :  { %v3040_v35 = vpop.eup %3039 }
 0x659   :  { %2195 = vst [vmem:[#allocation13 + $0xd8] sm:$0xff] %v2163_v22  ;;  %v2160_v44 = vsub.f32 %v4039_v48, %v2121_v1  ;;  %v2123_v27 = vmul.f32 0.6931472, %v3040_v35 }
 0x65a   :  { %v3042_v38 = vpop.eup %3041 }
 0x65b   :  { %2192 = vst [vmem:[#allocation13 + $0xc0] sm:$0xff] %v2160_v44  ;;  %v2161_v55 = vsub.f32 %v4043_v20, %v2123_v27  ;;  %v2129_v52 = vmul.f32 0.6931472, %v3042_v38 }
 0x65d   :  { %2193 = vst [vmem:[#allocation13 + $0xc8] sm:$0xff] %v2161_v55  ;;  %v2164_v25 = vsub.f32 %v4047_v9, %v2129_v52 }
 0x65e   :  { %v3044_v36 = vpop.eup %3043 }
 0x65f   :  { %v3046_v8 = vpop.eup %3045  ;;  %2196 = vst [vmem:[#allocation13 + $0xe0] sm:$0xff] %v2164_v25  ;;  %v2131_v45 = vmul.f32 0.6931472, %v3044_v36 }
 0x660   :  { %v2133_v54 = vmul.f32 0.6931472, %v3046_v8 }
 0x661   :  { %v2165_v28 = vsub.f32 %v4051_v60, %v2131_v45 }
 0x662   :  { %v3048_v29 = vpop.eup %3047  ;;  %v2166_v53 = vsub.f32 %v4054_v58, %v2133_v54 }
 0x663   :  { %2197 = vst [vmem:[#allocation13 + $0xe8] sm:$0xff] %v2165_v28  ;;  %v2135_v48 = vmul.f32 0.6931472, %v3048_v29 }
 0x664   :  { %2198 = vst [vmem:[#allocation13 + $0xf0] sm:$0xff] %v2166_v53 }
 0x665   :  { %v2167_v20 = vsub.f32 %v4059_v23, %v2135_v48 }
 0x667   :  { %2199 = vst [vmem:[#allocation13 + $0xf8] sm:$0xff] %v2167_v20 }
 0x668   :  { %3183 = shalt.err (!%p3180_p6)
}
 0x669   :  { %2211 = dma.vmem_to_hbm [thread:$0]  %s2206_s9, 4096, %s4108_s8, [#allocation4], %s3207_s19, %s3207_s19, %s3208_s20  }
 0x66a   :  { %3200 = dma.done.wait [#allocation4], 4096  }
 0x66b   :  { %3201 = vsyncadd [#allocation4], 4294963200 }
 0x66c   :  { %2215 = vsyncpa [#allocation3], 1 }
 0x66d   :  { %2216 = vsyncpa [#allocation6], 1 }
 0x66e   :  { %2217 = vsyncpa [#allocation9], 1 }
 0x66f   :  { %2218 = vsyncpa [#allocation12], 1 }
 0x670   :  { %2219 = vsyncpa [#allocation4], 1 }

</bundles_post_ra>
